<compile_context>
chip_gen: v5e
topology: v5e:2x2
jax: 0.10.0
libtpu: 0.0.40
codegen_flags: <defaults>
</compile_context>

<pallas_src>
import functools
import math

import jax
import jax.numpy as jnp
from jax.experimental import pallas as pl
from jax.experimental.pallas import tpu as pltpu


def _gelu_new(x):
    # ALBERT's default hidden_act ("gelu_new", tanh approximation)
    return 0.5 * x * (1.0 + jnp.tanh(
        jnp.sqrt(2.0 / jnp.pi) * (x + 0.044715 * x * x * x)))


def _layernorm(x, gamma, beta, eps):
    mean = jnp.mean(x, axis=-1, keepdims=True)
    var = jnp.mean((x - mean) ** 2, axis=-1, keepdims=True)
    return (x - mean) * jax.lax.rsqrt(var + eps) * gamma + beta


def _round_up(n, m):
    return ((n + m - 1) // m) * m


# --------------------------------------------------------------------------
# Pallas kernel: one PapuLayer forward for one (batch, query-tile) grid step.
#   grid = (B, S // TQ), dimension_semantics = ("parallel", "arbitrary")
#   K/V (head-major, bf16) live in VMEM scratch, computed once per batch.
# --------------------------------------------------------------------------
def papu_layer_kernel(x_ref, mask_ref, vec_ref,
                      wq_ref, wkv_ref, wd3_ref, wffn_ref, wffo_ref,
                      out_ref, k_sc, v_sc,
                      *, num_heads, head_dim, hidden, inter, tq, eps):
    f32, bf16 = jnp.float32, jnp.bfloat16
    H, I, nh, d, TQ = hidden, inter, num_heads, head_dim, tq
    S = x_ref.shape[1]

    def vrow(i, n):                       # (1, n) fp32 slice of the packed slab
        return vec_ref[i:i + 1, :n]

    qi = pl.program_id(1)
    x_sh = x_ref.at[0]                    # (S, H) view of this batch row

    # ---- full-sequence K/V: computed ONCE per (batch, layer), kept head-major
    #      in VMEM scratch across all query tiles (q axis is "arbitrary").
    @pl.when(qi == 0)
    def _():
        x_bf = x_sh[...].astype(bf16)                                   # (S, H)
        kv = jnp.dot(x_bf, wkv_ref[...], preferred_element_type=f32)    # (S, 2H)
        k = kv[:, :H] + vrow(1, H)
        v = kv[:, H:] + vrow(2, H)        # head_mask pre-folded into W_v / b_v
        k_sc[...] = jnp.transpose(k.reshape(S, nh, d), (1, 0, 2)).astype(bf16)
        v_sc[...] = jnp.transpose(v.reshape(S, nh, d), (1, 0, 2)).astype(bf16)

    # ---- query tile, sliced from the resident full-sequence block
    q0 = pl.multiple_of(qi * TQ, TQ)
    xq = x_sh[pl.ds(q0, TQ), :]                                         # (TQ, H)
    mask = mask_ref[0]                                                  # (1, S)

    # 1/sqrt(head_dim) pre-folded into W_q / b_q
    qp = jnp.dot(xq.astype(bf16), wq_ref[...],
                 preferred_element_type=f32) + vrow(0, H)               # (TQ, H)
    qh = jnp.transpose(qp.reshape(TQ, nh, d), (1, 0, 2)).astype(bf16)   # (nh,TQ,d)

    # head-batched attention on the MXU
    scores = jnp.einsum('nqd,nkd->nqk', qh, k_sc[...],
                        preferred_element_type=f32)                     # (nh,TQ,S)
    scores = scores + mask[None, :, :]
    scores = scores - jnp.max(scores, axis=-1, keepdims=True)
    e = jnp.exp(scores)
    inv = pl.reciprocal(jnp.sum(e, axis=-1, keepdims=True), approx=True)  # EUP
    probs = (e * inv).astype(bf16)

    ctx = jnp.einsum('nqk,nkd->nqd', probs, v_sc[...],
                     preferred_element_type=f32)                        # (nh,TQ,d)
    # dense projection == einsum('bfnd,ndh->bfh'): head-batched matmul against
    # W_d stored head-major, then a cheap leading-axis sum (no ctx transpose /
    # reshape across (8,128) tiles per grid step).
    ph = jnp.einsum('nqd,ndh->nqh', ctx.astype(bf16), wd3_ref[...],
                    preferred_element_type=f32)                         # (nh,TQ,H)
    proj = jnp.sum(ph, axis=0) + vrow(3, H)

    att = _layernorm(xq + proj, vrow(4, H), vrow(5, H), eps)

    # ---- feed-forward (bf16 matmuls, fp32 gelu / LayerNorm)
    f = jnp.dot(att.astype(bf16), wffn_ref[...],
                preferred_element_type=f32) + vrow(6, I)
    f = _gelu_new(f)
    f = jnp.dot(f.astype(bf16), wffo_ref[...],
                preferred_element_type=f32) + vrow(7, H)

    out_ref[0] = _layernorm(f + att, vrow(8, H), vrow(9, H), eps)


# --------------------------------------------------------------------------
# Feature / hardware probes
# --------------------------------------------------------------------------
def _probe_copy_kernel(x_ref, o_ref):
    o_ref[...] = x_ref[...]


@functools.lru_cache(maxsize=None)
def _buffered_supported():
    """Lowering-only probe (no execution): does this JAX/Mosaic build accept
    pipeline_mode=pl.Buffered(1) on a constant-index input BlockSpec?"""
    if not hasattr(pl, "Buffered"):
        return False
    try:
        fn = pl.pallas_call(
            _probe_copy_kernel,
            out_shape=jax.ShapeDtypeStruct((8, 128), jnp.float32),
            grid=(2,),
            in_specs=[pl.BlockSpec((8, 128), lambda i: (0, 0),
                                   pipeline_mode=pl.Buffered(1))],
            out_specs=pl.BlockSpec((8, 128), lambda i: (0, 0)))
        jax.jit(fn).lower(jax.ShapeDtypeStruct((8, 128), jnp.float32))
        return True
    except Exception:
        return False


@functools.lru_cache(maxsize=None)
def _vmem_capacity_bytes():
    try:
        return int(pltpu.get_tpu_info().vmem_capacity_bytes)
    except Exception:
        return 64 * 1024 * 1024            # conservative (v7x per-core)


def _vmem_need_bytes(S, TQ, H, I, nh, buffered_weights):
    d = H // nh
    wbuf = 1 if buffered_weights else 2
    weights = 2 * (4 * H * H + 2 * H * I) * wbuf          # bf16 weight matrices
    P = _round_up(max(H, I), 128)
    vecs = 4 * 16 * P * wbuf
    x_io = 2 * S * H * 4                                  # x block (2-buffered)
    mask_io = 2 * 8 * S * 4
    out_io = 2 * TQ * H * 4
    kv_scr = 2 * nh * S * d * 2                           # bf16 K/V scratch
    act = 4 * (2 * S * H                                  # kv fp32 (q==0 step)
               + 2 * TQ * H                               # q proj / qh
               + 3 * nh * TQ * S                          # scores / e / probs
               + nh * TQ * d                              # ctx
               + nh * TQ * H                              # per-head projection
               + 2 * TQ * I                               # ffn intermediate
               + 4 * TQ * H)                              # att / f / residuals
    return weights + vecs + x_io + mask_io + out_io + kv_scr + act


def _pick_query_tile(S, H, I, nh, buffered, cap):
    candidates = [t for t in (1024, 512, 256, 128, 64, 32, 16, 8) if S % t == 0]
    if not candidates:
        candidates = [S]
    for t in candidates:                                   # largest tile first
        if _vmem_need_bytes(S, t, H, I, nh, buffered) <= 0.8 * cap:
            return t
    return candidates[-1]


# --------------------------------------------------------------------------
# One-time host-side parameter prep (cache the result across forward calls):
#   * fold 1/sqrt(head_dim) into W_q / b_q
#   * fold (static) head_mask into per-head column scaling of W_v / b_v
#   * fuse W_k | W_v into one (H, 2H) matrix
#   * reshape W_dense head-major (nh, d, H)
#   * pack all small bias / LayerNorm vectors into one (16, P) fp32 slab
#   * cast weight matrices to bf16 (small vectors stay fp32)
# --------------------------------------------------------------------------
def prepare_layer_params(p, head_mask, num_heads):
    H = p["w_q"].shape[0]
    I = p["w_ffn"].shape[1]
    d = H // num_heads
    scale = 1.0 / math.sqrt(d)
    bf = lambda w: w.astype(jnp.bfloat16)

    hm = jnp.reshape(jnp.asarray(head_mask, jnp.float32), (num_heads,))
    hm_cols = jnp.repeat(hm, d)                            # (H,) per-head scale

    w_kv = jnp.concatenate([p["w_k"], p["w_v"] * hm_cols[None, :]], axis=1)
    wd3 = p["w_d"].reshape(num_heads, d, H)

    P = _round_up(max(H, I), 128)
    vecs = jnp.zeros((16, P), jnp.float32)
    rows = [(0, p["b_q"] * scale), (1, p["b_k"]), (2, p["b_v"] * hm_cols[None, :]),
            (3, p["b_d"]), (4, p["ln_att_g"]), (5, p["ln_att_b"]),
            (6, p["b_ffn"]), (7, p["b_ffo"]), (8, p["ln_out_g"]), (9, p["ln_out_b"])]
    for i, v in rows:
        v = jnp.reshape(v, (-1,))
        vecs = vecs.at[i, :v.shape[0]].set(v)

    return dict(w_q=bf(p["w_q"] * scale), w_kv=bf(w_kv), w_d3=bf(wd3),
                w_ffn=bf(p["w_ffn"]), w_ffo=bf(p["w_ffo"]),
                vecs=vecs, hidden=H, inter=I)


# --------------------------------------------------------------------------
# One PapuLayer via pallas_call (grid over batch x query tiles)
# --------------------------------------------------------------------------
def papu_layer_forward(x, attention_mask, prepared, *, num_heads, eps=1e-12,
                       query_tile=None):
    """`prepared` must come from prepare_layer_params."""
    B, S, H = x.shape
    I = prepared["inter"]
    d = H // num_heads

    cap = _vmem_capacity_bytes()
    buffered = _buffered_supported()
    TQ = query_tile if query_tile is not None else _pick_query_tile(
        S, H, I, num_heads, buffered, cap)
    assert S % TQ == 0, (S, TQ)
    need = _vmem_need_bytes(S, TQ, H, I, num_heads, buffered)
    vmem_limit = int(min(cap * 0.9, max(need * 2, 24 * 1024 * 1024)))

    kernel = functools.partial(papu_layer_kernel, num_heads=num_heads,
                               head_dim=d, hidden=H, inter=I, tq=TQ, eps=eps)

    def const(shape):
        # Constant weights are revisited every grid step; single-buffering
        # halves their VMEM residency (matters on v7x's 64 MiB VMEM).
        if buffered:
            return pl.BlockSpec(shape, lambda b, q: (0,) * len(shape),
                                pipeline_mode=pl.Buffered(1))
        return pl.BlockSpec(shape, lambda b, q: (0,) * len(shape))

    R, P = prepared["vecs"].shape
    in_specs = [
        pl.BlockSpec((1, S, H), lambda b, q: (b, 0, 0)),    # x (K/V source + q tiles)
        pl.BlockSpec((1, 1, S), lambda b, q: (b, 0, 0)),    # additive attention mask
        const((R, P)),                                      # packed bias/LN slab
        const((H, H)),                                      # W_q (pre-scaled)
        const((H, 2 * H)),                                  # W_k | W_v (hm folded)
        const((num_heads, d, H)),                           # W_dense head-major
        const((H, I)),                                      # W_ffn
        const((I, H)),                                      # W_ffn_out
    ]
    return pl.pallas_call(
        kernel,
        out_shape=jax.ShapeDtypeStruct((B, S, H), jnp.float32),
        grid=(B, S // TQ),
        in_specs=in_specs,
        out_specs=pl.BlockSpec((1, TQ, H), lambda b, q: (b, q, 0)),
        scratch_shapes=[pltpu.VMEM((num_heads, S, d), jnp.bfloat16),   # K scratch
                        pltpu.VMEM((num_heads, S, d), jnp.bfloat16)],  # V scratch
        compiler_params=pltpu.CompilerParams(
            dimension_semantics=("parallel", "arbitrary"),
            vmem_limit_bytes=vmem_limit),
    )(x, attention_mask, prepared["vecs"], prepared["w_q"], prepared["w_kv"],
      prepared["w_d3"], prepared["w_ffn"], prepared["w_ffo"])


# --------------------------------------------------------------------------
# PapuLayerGroup forward (loops over inner_group_num layers)
# --------------------------------------------------------------------------
def papu_layer_group_forward(hidden_states, attention_mask, head_mask, layer_params,
                             *, num_heads, output_attentions=False,
                             output_hidden_states=False, query_tile=None):
    # TODO(synk): output_attentions=True path not materialized from the kernel.
    # For repeated forward calls, run prepare_layer_params once and reuse it
    # (it folds head_mask / scaling and casts weights to bf16 on the host).
    prepared = [prepare_layer_params(p, head_mask[i], num_heads)
                for i, p in enumerate(layer_params)]
    layer_hidden_states = ()
    for p in prepared:
        hidden_states = papu_layer_forward(hidden_states, attention_mask, p,
                                           num_heads=num_heads,
                                           query_tile=query_tile)
        if output_hidden_states:
            layer_hidden_states = layer_hidden_states + (hidden_states,)
    outputs = (hidden_states,)
    if output_hidden_states:
        outputs = outputs + (layer_hidden_states,)
    return outputs


# --------------------------------------------------------------------------
# Deterministic parameter init (shapes from PapuLayer.__init__)
# --------------------------------------------------------------------------
def init_layer_params(key, H, I):
    ks = jax.random.split(key, 12)
    std = 0.02
    lin = lambda k, fi, fo: std * jax.random.normal(k, (fi, fo), jnp.float32)
    vec = lambda k, n: std * jax.random.normal(k, (1, n), jnp.float32)
    return dict(
        w_q=lin(ks[0], H, H), b_q=vec(ks[1], H),
        w_k=lin(ks[2], H, H), b_k=vec(ks[3], H),
        w_v=lin(ks[4], H, H), b_v=vec(ks[5], H),
        w_d=lin(ks[6], H, H), b_d=vec(ks[7], H),
        ln_att_g=jnp.ones((1, H), jnp.float32), ln_att_b=jnp.zeros((1, H), jnp.float32),
        w_ffn=lin(ks[8], H, I), b_ffn=vec(ks[9], I),
        w_ffo=lin(ks[10], I, H), b_ffo=vec(ks[11], H),
        ln_out_g=jnp.ones((1, H), jnp.float32), ln_out_b=jnp.zeros((1, H), jnp.float32),
    )


# --------------------------------------------------------------------------
# Pure-JAX fp32 reference (mirrors the PyTorch forward exactly)
# --------------------------------------------------------------------------
def papu_layer_ref(x, mask, head_mask, p, num_heads, eps=1e-12):
    B, S, H = x.shape
    d = H // num_heads
    q = x @ p["w_q"] + p["b_q"]
    k = x @ p["w_k"] + p["b_k"]
    v = x @ p["w_v"] + p["b_v"]
    split = lambda t: t.reshape(B, S, num_heads, d).transpose(0, 2, 1, 3)
    qh, kh, vh = split(q), split(k), split(v)
    scores = jnp.einsum("bhqd,bhkd->bhqk", qh, kh) / math.sqrt(d)
    scores = scores + mask[:, None, :, :]              # (B,1,1,S) broadcast
    probs = jax.nn.softmax(scores, axis=-1)
    probs = probs * head_mask[0][None, :, None, None]
    ctx = jnp.einsum("bhqk,bhkd->bhqd", probs, vh).transpose(0, 2, 1, 3).reshape(B, S, H)
    proj = ctx @ p["w_d"] + p["b_d"]
    att = _layernorm(x + proj, p["ln_att_g"], p["ln_att_b"], eps)
    f = _gelu_new(att @ p["w_ffn"] + p["b_ffn"])
    f = f @ p["w_ffo"] + p["b_ffo"]
    return _layernorm(f + att, p["ln_out_g"], p["ln_out_b"], eps)


if __name__ == "__main__":
    B, S, H, NUM_HEADS, INTER, N_LAYERS = 2, 16, 32, 4, 64, 2

    key = jax.random.PRNGKey(0)
    kx, kp = jax.random.split(key, 2)

    x = jax.random.normal(kx, (B, S, H), jnp.float32)
    # additive attention mask (0 = attend, -1e9 = masked); mask last 4 keys of batch 1
    attention_mask = jnp.zeros((B, 1, S), jnp.float32)
    attention_mask = attention_mask.at[1, 0, S - 4:].set(-1e9)
    # per-layer head masks: layer 0 trivial, layer 1 scales/zeroes heads
    head_mask = [jnp.ones((1, NUM_HEADS), jnp.float32),
                 jnp.array([[1.0, 1.0, 0.5, 0.0]], jnp.float32)]

    layer_params = [init_layer_params(k, H, INTER)
                    for k in jax.random.split(kp, N_LAYERS)]

    # query_tile=8 with S=16 forces a 2-step q axis, exercising the K/V-scratch
    # carry across query tiles.
    outputs = papu_layer_group_forward(x, attention_mask, head_mask, layer_params,
                                       num_heads=NUM_HEADS, query_tile=8)
    hidden = jax.block_until_ready(outputs[0])
    assert hidden.shape == (B, S, H)

    # correctness check against pure-JAX fp32 reference of the PyTorch semantics
    # (kernel runs bf16 matmuls with fp32 accumulation -> bf16-level tolerance)
    ref = x
    for li in range(N_LAYERS):
        ref = papu_layer_ref(ref, attention_mask, head_mask[li],
                             layer_params[li], NUM_HEADS)
    err = float(jnp.max(jnp.abs(hidden - ref)))
    assert err < 5e-2, err

    print("KERNEL_OK")
</pallas_src>

<mosaic_0001>
module attributes {stable_mosaic.version = 11 : i64} {
  func.func @papu_layer_kernel(%arg0: i32, %arg1: i32, %arg2: memref<1x16x32xf32, #tpu.memory_space<vmem>>, %arg3: memref<1x1x16xf32, #tpu.memory_space<vmem>>, %arg4: memref<16x128xf32, #tpu.memory_space<vmem>>, %arg5: memref<32x32xbf16, #tpu.memory_space<vmem>>, %arg6: memref<32x64xbf16, #tpu.memory_space<vmem>>, %arg7: memref<4x8x32xbf16, #tpu.memory_space<vmem>>, %arg8: memref<32x64xbf16, #tpu.memory_space<vmem>>, %arg9: memref<64x32xbf16, #tpu.memory_space<vmem>>, %arg10: memref<1x8x32xf32, #tpu.memory_space<vmem>>, %arg11: memref<4x16x8xbf16, #tpu.memory_space<vmem>>, %arg12: memref<4x16x8xbf16, #tpu.memory_space<vmem>>) attributes {dimension_semantics = [#tpu.dimension_semantics<parallel>, #tpu.dimension_semantics<arbitrary>], iteration_bounds = array<i64: 2, 2>, scalar_prefetch = 0 : i64, scratch_operands = 2 : i64, tpu.core_type = #tpu.core_type<tc>, window_params = [{transform_indices = @transform_0, window_bounds = array<i64: 1, 16, 32>}, {transform_indices = @transform_1, window_bounds = array<i64: 1, 1, 16>}, {pipeline_mode = #tpu.pipeline_mode<synchronous>, transform_indices = @transform_2, window_bounds = array<i64: 16, 128>}, {pipeline_mode = #tpu.pipeline_mode<synchronous>, transform_indices = @transform_3, window_bounds = array<i64: 32, 32>}, {pipeline_mode = #tpu.pipeline_mode<synchronous>, transform_indices = @transform_4, window_bounds = array<i64: 32, 64>}, {pipeline_mode = #tpu.pipeline_mode<synchronous>, transform_indices = @transform_5, window_bounds = array<i64: 4, 8, 32>}, {pipeline_mode = #tpu.pipeline_mode<synchronous>, transform_indices = @transform_6, window_bounds = array<i64: 32, 64>}, {pipeline_mode = #tpu.pipeline_mode<synchronous>, transform_indices = @transform_7, window_bounds = array<i64: 64, 32>}, {transform_indices = @transform_8, window_bounds = array<i64: 1, 8, 32>}]} {
    %c0_i32 = arith.constant 0 : i32
    %0 = arith.cmpi eq, %arg1, %c0_i32 : i32
    %1 = arith.extui %0 : i1 to i32
    %c0_i32_0 = arith.constant 0 : i32
    %c0_i32_1 = arith.constant 0 : i32
    %2 = arith.cmpi ne, %1, %c0_i32_1 : i32
    scf.if %2 {
      %124 = arith.index_cast %c0_i32_0 : i32 to index
      %c0_57 = arith.constant 0 : index
      %c0_58 = arith.constant 0 : index
      %125 = vector.load %arg2[%124, %c0_57, %c0_58] : memref<1x16x32xf32, #tpu.memory_space<vmem>>, vector<1x16x32xf32>
      %126 = vector.shape_cast %125 : vector<1x16x32xf32> to vector<16x32xf32>
      %127 = arith.truncf %126 : vector<16x32xf32> to vector<16x32xbf16>
      %c0_59 = arith.constant 0 : index
      %c0_60 = arith.constant 0 : index
      %128 = vector.load %arg6[%c0_59, %c0_60] : memref<32x64xbf16, #tpu.memory_space<vmem>>, vector<32x64xbf16>
      %cst_61 = arith.constant dense<0.000000e+00> : vector<16x64xf32>
      %129 = tpu.matmul %127, %128, %cst_61 {dimension_numbers = #tpu.dot_dimension_numbers<[1], [0], [0], [1], [0, 0, 1, 1], [], []>} : vector<16x32xbf16>, vector<32x64xbf16>, vector<16x64xf32> -> vector<16x64xf32>
      %130 = vector.extract_strided_slice %129 {offsets = [0, 0], sizes = [16, 32], strides = [1, 1]} : vector<16x64xf32> to vector<16x32xf32>
      %c1 = arith.constant 1 : index
      %c0_62 = arith.constant 0 : index
      %131 = vector.load %arg4[%c1, %c0_62] : memref<16x128xf32, #tpu.memory_space<vmem>>, vector<1x32xf32>
      %132 = vector.broadcast %131 : vector<1x32xf32> to vector<16x32xf32>
      %133 = arith.addf %130, %132 : vector<16x32xf32>
      %134 = vector.extract_strided_slice %129 {offsets = [0, 32], sizes = [16, 32], strides = [1, 1]} : vector<16x64xf32> to vector<16x32xf32>
      %c2 = arith.constant 2 : index
      %c0_63 = arith.constant 0 : index
      %135 = vector.load %arg4[%c2, %c0_63] : memref<16x128xf32, #tpu.memory_space<vmem>>, vector<1x32xf32>
      %136 = vector.broadcast %135 : vector<1x32xf32> to vector<16x32xf32>
      %137 = arith.addf %134, %136 : vector<16x32xf32>
      %138 = vector.shape_cast %133 : vector<16x32xf32> to vector<16x4x8xf32>
      %139 = tpu.transpose %138, [1, 0, 2] : vector<16x4x8xf32> -> vector<4x16x8xf32>
      %140 = arith.truncf %139 : vector<4x16x8xf32> to vector<4x16x8xbf16>
      %c0_64 = arith.constant 0 : index
      %c0_65 = arith.constant 0 : index
      %c0_66 = arith.constant 0 : index
      %141 = vector.load %arg11[%c0_64, %c0_65, %c0_66] : memref<4x16x8xbf16, #tpu.memory_space<vmem>>, vector<4x16x8xbf16>
      tpu.vector_store %arg11[%c0_64, %c0_65, %c0_66], %140 {strides = array<i32>} : memref<4x16x8xbf16, #tpu.memory_space<vmem>>, vector<4x16x8xbf16>,
      %142 = vector.shape_cast %137 : vector<16x32xf32> to vector<16x4x8xf32>
      %143 = tpu.transpose %142, [1, 0, 2] : vector<16x4x8xf32> -> vector<4x16x8xf32>
      %144 = arith.truncf %143 : vector<4x16x8xf32> to vector<4x16x8xbf16>
      %c0_67 = arith.constant 0 : index
      %c0_68 = arith.constant 0 : index
      %c0_69 = arith.constant 0 : index
      %145 = vector.load %arg12[%c0_67, %c0_68, %c0_69] : memref<4x16x8xbf16, #tpu.memory_space<vmem>>, vector<4x16x8xbf16>
      tpu.vector_store %arg12[%c0_67, %c0_68, %c0_69], %144 {strides = array<i32>} : memref<4x16x8xbf16, #tpu.memory_space<vmem>>, vector<4x16x8xbf16>,
    } else {
    }
    %c8_i32 = arith.constant 8 : i32
    %3 = arith.muli %arg1, %c8_i32 : i32
    %4 = tpu.assume_multiple %3, 8 : i32
    %c0_i32_2 = arith.constant 0 : i32
    %c0_i32_3 = arith.constant 0 : i32
    %c0_i32_4 = arith.constant 0 : i32
    %5 = tpu.memref_slice %arg2[%c0_i32_2, %c0_i32_3, %c0_i32_4] : memref<1x16x32xf32, #tpu.memory_space<vmem>> -> memref<1x16x32xf32, #tpu.memory_space<vmem>>
    %6 = tpu.memref_squeeze %5 : memref<1x16x32xf32, #tpu.memory_space<vmem>> -> memref<16x32xf32, #tpu.memory_space<vmem>>
    %7 = arith.index_cast %4 : i32 to index
    %c0 = arith.constant 0 : index
    %8 = vector.load %6[%7, %c0] : memref<16x32xf32, #tpu.memory_space<vmem>>, vector<8x32xf32>
    %c0_5 = arith.constant 0 : index
    %c0_6 = arith.constant 0 : index
    %c0_7 = arith.constant 0 : index
    %9 = vector.load %arg3[%c0_5, %c0_6, %c0_7] : memref<1x1x16xf32, #tpu.memory_space<vmem>>, vector<1x1x16xf32>
    %10 = vector.shape_cast %9 : vector<1x1x16xf32> to vector<1x16xf32>
    %11 = arith.truncf %8 : vector<8x32xf32> to vector<8x32xbf16>
    %c0_8 = arith.constant 0 : index
    %c0_9 = arith.constant 0 : index
    %12 = vector.load %arg5[%c0_8, %c0_9] : memref<32x32xbf16, #tpu.memory_space<vmem>>, vector<32x32xbf16>
    %cst = arith.constant dense<0.000000e+00> : vector<8x32xf32>
    %13 = tpu.matmul %11, %12, %cst {dimension_numbers = #tpu.dot_dimension_numbers<[1], [0], [0], [1], [0, 0, 1, 1], [], []>} : vector<8x32xbf16>, vector<32x32xbf16>, vector<8x32xf32> -> vector<8x32xf32>
    %c0_10 = arith.constant 0 : index
    %c0_11 = arith.constant 0 : index
    %14 = vector.load %arg4[%c0_10, %c0_11] : memref<16x128xf32, #tpu.memory_space<vmem>>, vector<1x32xf32>
    %15 = vector.broadcast %14 : vector<1x32xf32> to vector<8x32xf32>
    %16 = arith.addf %13, %15 : vector<8x32xf32>
    %17 = vector.shape_cast %16 : vector<8x32xf32> to vector<8x4x8xf32>
    %18 = tpu.transpose %17, [1, 0, 2] : vector<8x4x8xf32> -> vector<4x8x8xf32>
    %19 = arith.truncf %18 : vector<4x8x8xf32> to vector<4x8x8xbf16>
    %c0_12 = arith.constant 0 : index
    %c0_13 = arith.constant 0 : index
    %c0_14 = arith.constant 0 : index
    %20 = vector.load %arg11[%c0_12, %c0_13, %c0_14] : memref<4x16x8xbf16, #tpu.memory_space<vmem>>, vector<4x16x8xbf16>
    "tpu.trace_start"() <{level = 10 : i32, message = "nqd,nkd->nqk"}> : () -> ()
    %cst_15 = arith.constant dense<0.000000e+00> : vector<4x8x16xf32>
    %21 = tpu.matmul %19, %20, %cst_15 {dimension_numbers = #tpu.dot_dimension_numbers<[2], [2], [1], [1], [0, 0, 0, 1, 1, 1], [0], [0]>} : vector<4x8x8xbf16>, vector<4x16x8xbf16>, vector<4x8x16xf32> -> vector<4x8x16xf32>
    "tpu.trace_stop"() : () -> ()
    %22 = vector.shape_cast %10 : vector<1x16xf32> to vector<1x1x16xf32>
    %23 = vector.broadcast %22 : vector<1x1x16xf32> to vector<4x8x16xf32>
    %24 = arith.addf %21, %23 : vector<4x8x16xf32>
    %cst_16 = arith.constant dense<0xFF800000> : vector<4x8xf32>
    %25 = vector.multi_reduction <maximumf>, %24, %cst_16 [2] : vector<4x8x16xf32> to vector<4x8xf32>
    %26 = vector.shape_cast %25 : vector<4x8xf32> to vector<4x8x1xf32>
    %27 = vector.broadcast %26 : vector<4x8x1xf32> to vector<4x8x16xf32>
    %28 = arith.subf %24, %27 : vector<4x8x16xf32>
    %29 = math.exp %28 : vector<4x8x16xf32>
    %cst_17 = arith.constant dense<0.000000e+00> : vector<4x8xf32>
    %30 = vector.multi_reduction <add>, %29, %cst_17 [2] : vector<4x8x16xf32> to vector<4x8xf32>
    %31 = vector.shape_cast %30 : vector<4x8xf32> to vector<4x8x1xf32>
    %32 = tpu.reciprocal %31 {approx = true} : vector<4x8x1xf32> -> vector<4x8x1xf32>
    %33 = vector.broadcast %32 : vector<4x8x1xf32> to vector<4x8x16xf32>
    %34 = arith.mulf %29, %33 : vector<4x8x16xf32>
    %35 = arith.truncf %34 : vector<4x8x16xf32> to vector<4x8x16xbf16>
    %c0_18 = arith.constant 0 : index
    %c0_19 = arith.constant 0 : index
    %c0_20 = arith.constant 0 : index
    %36 = vector.load %arg12[%c0_18, %c0_19, %c0_20] : memref<4x16x8xbf16, #tpu.memory_space<vmem>>, vector<4x16x8xbf16>
    "tpu.trace_start"() <{level = 10 : i32, message = "nqk,nkd->nqd"}> : () -> ()
    %cst_21 = arith.constant dense<0.000000e+00> : vector<4x8x8xf32>
    %37 = tpu.matmul %35, %36, %cst_21 {dimension_numbers = #tpu.dot_dimension_numbers<[2], [1], [1], [2], [0, 0, 0, 1, 1, 2], [0], [0]>} : vector<4x8x16xbf16>, vector<4x16x8xbf16>, vector<4x8x8xf32> -> vector<4x8x8xf32>
    "tpu.trace_stop"() : () -> ()
    %38 = arith.truncf %37 : vector<4x8x8xf32> to vector<4x8x8xbf16>
    %c0_22 = arith.constant 0 : index
    %c0_23 = arith.constant 0 : index
    %c0_24 = arith.constant 0 : index
    %39 = vector.load %arg7[%c0_22, %c0_23, %c0_24] : memref<4x8x32xbf16, #tpu.memory_space<vmem>>, vector<4x8x32xbf16>
    "tpu.trace_start"() <{level = 10 : i32, message = "nqd,ndh->nqh"}> : () -> ()
    %cst_25 = arith.constant dense<0.000000e+00> : vector<4x8x32xf32>
    %40 = tpu.matmul %38, %39, %cst_25 {dimension_numbers = #tpu.dot_dimension_numbers<[2], [1], [1], [2], [0, 0, 0, 1, 1, 2], [0], [0]>} : vector<4x8x8xbf16>, vector<4x8x32xbf16>, vector<4x8x32xf32> -> vector<4x8x32xf32>
    "tpu.trace_stop"() : () -> ()
    %cst_26 = arith.constant dense<0.000000e+00> : vector<8x32xf32>
    %41 = vector.multi_reduction <add>, %40, %cst_26 [0] : vector<4x8x32xf32> to vector<8x32xf32>
    %c3 = arith.constant 3 : index
    %c0_27 = arith.constant 0 : index
    %42 = vector.load %arg4[%c3, %c0_27] : memref<16x128xf32, #tpu.memory_space<vmem>>, vector<1x32xf32>
    %43 = vector.broadcast %42 : vector<1x32xf32> to vector<8x32xf32>
    %44 = arith.addf %41, %43 : vector<8x32xf32>
    %45 = arith.addf %8, %44 : vector<8x32xf32>
    %c4 = arith.constant 4 : index
    %c0_28 = arith.constant 0 : index
    %46 = vector.load %arg4[%c4, %c0_28] : memref<16x128xf32, #tpu.memory_space<vmem>>, vector<1x32xf32>
    %c5 = arith.constant 5 : index
    %c0_29 = arith.constant 0 : index
    %47 = vector.load %arg4[%c5, %c0_29] : memref<16x128xf32, #tpu.memory_space<vmem>>, vector<1x32xf32>
    %cst_30 = arith.constant dense<0.000000e+00> : vector<8xf32>
    %48 = vector.multi_reduction <add>, %45, %cst_30 [1] : vector<8x32xf32> to vector<8xf32>
    %49 = vector.shape_cast %48 : vector<8xf32> to vector<8x1xf32>
    %cst_31 = arith.constant 3.200000e+01 : f32
    %50 = vector.broadcast %cst_31 : f32 to vector<8x1xf32>
    %51 = arith.divf %49, %50 : vector<8x1xf32>
    %52 = vector.broadcast %51 : vector<8x1xf32> to vector<8x32xf32>
    %53 = arith.subf %45, %52 : vector<8x32xf32>
    %54 = arith.mulf %53, %53 : vector<8x32xf32>
    %cst_32 = arith.constant dense<0.000000e+00> : vector<8xf32>
    %55 = vector.multi_reduction <add>, %54, %cst_32 [1] : vector<8x32xf32> to vector<8xf32>
    %56 = vector.shape_cast %55 : vector<8xf32> to vector<8x1xf32>
    %cst_33 = arith.constant 3.200000e+01 : f32
    %57 = vector.broadcast %cst_33 : f32 to vector<8x1xf32>
    %58 = arith.divf %56, %57 : vector<8x1xf32>
    %59 = vector.broadcast %51 : vector<8x1xf32> to vector<8x32xf32>
    %60 = arith.subf %45, %59 : vector<8x32xf32>
    %cst_34 = arith.constant 9.99999996E-13 : f32
    %61 = vector.broadcast %cst_34 : f32 to vector<8x1xf32>
    %62 = arith.addf %58, %61 : vector<8x1xf32>
    %63 = math.rsqrt %62 : vector<8x1xf32>
    %64 = vector.broadcast %63 : vector<8x1xf32> to vector<8x32xf32>
    %65 = arith.mulf %60, %64 : vector<8x32xf32>
    %66 = vector.broadcast %46 : vector<1x32xf32> to vector<8x32xf32>
    %67 = arith.mulf %65, %66 : vector<8x32xf32>
    %68 = vector.broadcast %47 : vector<1x32xf32> to vector<8x32xf32>
    %69 = arith.addf %67, %68 : vector<8x32xf32>
    %70 = arith.truncf %69 : vector<8x32xf32> to vector<8x32xbf16>
    %c0_35 = arith.constant 0 : index
    %c0_36 = arith.constant 0 : index
    %71 = vector.load %arg8[%c0_35, %c0_36] : memref<32x64xbf16, #tpu.memory_space<vmem>>, vector<32x64xbf16>
    %cst_37 = arith.constant dense<0.000000e+00> : vector<8x64xf32>
    %72 = tpu.matmul %70, %71, %cst_37 {dimension_numbers = #tpu.dot_dimension_numbers<[1], [0], [0], [1], [0, 0, 1, 1], [], []>} : vector<8x32xbf16>, vector<32x64xbf16>, vector<8x64xf32> -> vector<8x64xf32>
    %c6 = arith.constant 6 : index
    %c0_38 = arith.constant 0 : index
    %73 = vector.load %arg4[%c6, %c0_38] : memref<16x128xf32, #tpu.memory_space<vmem>>, vector<1x64xf32>
    %74 = vector.broadcast %73 : vector<1x64xf32> to vector<8x64xf32>
    %75 = arith.addf %72, %74 : vector<8x64xf32>
    %cst_39 = arith.constant 5.000000e-01 : f32
    %76 = vector.broadcast %cst_39 : f32 to vector<8x64xf32>
    %77 = arith.mulf %76, %75 : vector<8x64xf32>
    %cst_40 = arith.constant 0.636619746 : f32
    %78 = math.sqrt %cst_40 : f32
    %cst_41 = arith.constant 4.471500e-02 : f32
    %79 = vector.broadcast %cst_41 : f32 to vector<8x64xf32>
    %80 = arith.mulf %79, %75 : vector<8x64xf32>
    %81 = arith.mulf %80, %75 : vector<8x64xf32>
    %82 = arith.mulf %81, %75 : vector<8x64xf32>
    %83 = arith.addf %75, %82 : vector<8x64xf32>
    %84 = vector.broadcast %78 : f32 to vector<8x64xf32>
    %85 = arith.mulf %84, %83 : vector<8x64xf32>
    %86 = math.tanh %85 : vector<8x64xf32>
    %cst_42 = arith.constant 1.000000e+00 : f32
    %87 = vector.broadcast %cst_42 : f32 to vector<8x64xf32>
    %88 = arith.addf %87, %86 : vector<8x64xf32>
    %89 = arith.mulf %77, %88 : vector<8x64xf32>
    %90 = arith.truncf %89 : vector<8x64xf32> to vector<8x64xbf16>
    %c0_43 = arith.constant 0 : index
    %c0_44 = arith.constant 0 : index
    %91 = vector.load %arg9[%c0_43, %c0_44] : memref<64x32xbf16, #tpu.memory_space<vmem>>, vector<64x32xbf16>
    %cst_45 = arith.constant dense<0.000000e+00> : vector<8x32xf32>
    %92 = tpu.matmul %90, %91, %cst_45 {dimension_numbers = #tpu.dot_dimension_numbers<[1], [0], [0], [1], [0, 0, 1, 1], [], []>} : vector<8x64xbf16>, vector<64x32xbf16>, vector<8x32xf32> -> vector<8x32xf32>
    %c7 = arith.constant 7 : index
    %c0_46 = arith.constant 0 : index
    %93 = vector.load %arg4[%c7, %c0_46] : memref<16x128xf32, #tpu.memory_space<vmem>>, vector<1x32xf32>
    %94 = vector.broadcast %93 : vector<1x32xf32> to vector<8x32xf32>
    %95 = arith.addf %92, %94 : vector<8x32xf32>
    %96 = arith.addf %95, %69 : vector<8x32xf32>
    %c8 = arith.constant 8 : index
    %c0_47 = arith.constant 0 : index
    %97 = vector.load %arg4[%c8, %c0_47] : memref<16x128xf32, #tpu.memory_space<vmem>>, vector<1x32xf32>
    %c9 = arith.constant 9 : index
    %c0_48 = arith.constant 0 : index
    %98 = vector.load %arg4[%c9, %c0_48] : memref<16x128xf32, #tpu.memory_space<vmem>>, vector<1x32xf32>
    %cst_49 = arith.constant dense<0.000000e+00> : vector<8xf32>
    %99 = vector.multi_reduction <add>, %96, %cst_49 [1] : vector<8x32xf32> to vector<8xf32>
    %100 = vector.shape_cast %99 : vector<8xf32> to vector<8x1xf32>
    %cst_50 = arith.constant 3.200000e+01 : f32
    %101 = vector.broadcast %cst_50 : f32 to vector<8x1xf32>
    %102 = arith.divf %100, %101 : vector<8x1xf32>
    %103 = vector.broadcast %102 : vector<8x1xf32> to vector<8x32xf32>
    %104 = arith.subf %96, %103 : vector<8x32xf32>
    %105 = arith.mulf %104, %104 : vector<8x32xf32>
    %cst_51 = arith.constant dense<0.000000e+00> : vector<8xf32>
    %106 = vector.multi_reduction <add>, %105, %cst_51 [1] : vector<8x32xf32> to vector<8xf32>
    %107 = vector.shape_cast %106 : vector<8xf32> to vector<8x1xf32>
    %cst_52 = arith.constant 3.200000e+01 : f32
    %108 = vector.broadcast %cst_52 : f32 to vector<8x1xf32>
    %109 = arith.divf %107, %108 : vector<8x1xf32>
    %110 = vector.broadcast %102 : vector<8x1xf32> to vector<8x32xf32>
    %111 = arith.subf %96, %110 : vector<8x32xf32>
    %cst_53 = arith.constant 9.99999996E-13 : f32
    %112 = vector.broadcast %cst_53 : f32 to vector<8x1xf32>
    %113 = arith.addf %109, %112 : vector<8x1xf32>
    %114 = math.rsqrt %113 : vector<8x1xf32>
    %115 = vector.broadcast %114 : vector<8x1xf32> to vector<8x32xf32>
    %116 = arith.mulf %111, %115 : vector<8x32xf32>
    %117 = vector.broadcast %97 : vector<1x32xf32> to vector<8x32xf32>
    %118 = arith.mulf %116, %117 : vector<8x32xf32>
    %119 = vector.broadcast %98 : vector<1x32xf32> to vector<8x32xf32>
    %120 = arith.addf %118, %119 : vector<8x32xf32>
    %c0_54 = arith.constant 0 : index
    %c0_55 = arith.constant 0 : index
    %c0_56 = arith.constant 0 : index
    %121 = vector.load %arg10[%c0_54, %c0_55, %c0_56] : memref<1x8x32xf32, #tpu.memory_space<vmem>>, vector<1x8x32xf32>
    %122 = vector.shape_cast %121 : vector<1x8x32xf32> to vector<8x32xf32>
    %123 = vector.shape_cast %120 : vector<8x32xf32> to vector<1x8x32xf32>
    tpu.vector_store %arg10[%c0_54, %c0_55, %c0_56], %123 {strides = array<i32>} : memref<1x8x32xf32, #tpu.memory_space<vmem>>, vector<1x8x32xf32>,
    return
  }
  func.func @transform_0(%arg0: i32, %arg1: i32) -> (i32, i32, i32) {
    %c0_i32 = arith.constant 0 : i32
    %c0_i32_0 = arith.constant 0 : i32
    %c0_i32_1 = arith.constant 0 : i32
    return %arg0, %c0_i32, %c0_i32_0 : i32, i32, i32
  }
  func.func @transform_1(%arg0: i32, %arg1: i32) -> (i32, i32, i32) {
    %c0_i32 = arith.constant 0 : i32
    %c0_i32_0 = arith.constant 0 : i32
    %c0_i32_1 = arith.constant 0 : i32
    return %arg0, %c0_i32, %c0_i32_0 : i32, i32, i32
  }
  func.func @transform_2(%arg0: i32, %arg1: i32) -> (i32, i32) {
    %c0_i32 = arith.constant 0 : i32
    %c0_i32_0 = arith.constant 0 : i32
    %c0_i32_1 = arith.constant 0 : i32
    return %c0_i32, %c0_i32_0 : i32, i32
  }
  func.func @transform_3(%arg0: i32, %arg1: i32) -> (i32, i32) {
    %c0_i32 = arith.constant 0 : i32
    %c0_i32_0 = arith.constant 0 : i32
    %c0_i32_1 = arith.constant 0 : i32
    return %c0_i32, %c0_i32_0 : i32, i32
  }
  func.func @transform_4(%arg0: i32, %arg1: i32) -> (i32, i32) {
    %c0_i32 = arith.constant 0 : i32
    %c0_i32_0 = arith.constant 0 : i32
    %c0_i32_1 = arith.constant 0 : i32
    return %c0_i32, %c0_i32_0 : i32, i32
  }
  func.func @transform_5(%arg0: i32, %arg1: i32) -> (i32, i32, i32) {
    %c0_i32 = arith.constant 0 : i32
    %c0_i32_0 = arith.constant 0 : i32
    %c0_i32_1 = arith.constant 0 : i32
    %c0_i32_2 = arith.constant 0 : i32
    return %c0_i32, %c0_i32_0, %c0_i32_1 : i32, i32, i32
  }
  func.func @transform_6(%arg0: i32, %arg1: i32) -> (i32, i32) {
    %c0_i32 = arith.constant 0 : i32
    %c0_i32_0 = arith.constant 0 : i32
    %c0_i32_1 = arith.constant 0 : i32
    return %c0_i32, %c0_i32_0 : i32, i32
  }
  func.func @transform_7(%arg0: i32, %arg1: i32) -> (i32, i32) {
    %c0_i32 = arith.constant 0 : i32
    %c0_i32_0 = arith.constant 0 : i32
    %c0_i32_1 = arith.constant 0 : i32
    return %c0_i32, %c0_i32_0 : i32, i32
  }
  func.func @transform_8(%arg0: i32, %arg1: i32) -> (i32, i32, i32) {
    %c0_i32 = arith.constant 0 : i32
    %c0_i32_0 = arith.constant 0 : i32
    return %arg0, %arg1, %c0_i32 : i32, i32, i32
  }
}

</mosaic_0001>

<bundles_post_ra>
// kernel: tpu_custom_call.1
= control target key start
LH: loop header
LB: loop body
LE: loop exit
PB: predicated region body
PF: predicated region fallthrough
CT: control target
= control target key end

     0   :  { %s3097_s0 = inlined_call_operand.vmem [shape: f32[2,16,32], index: 0, kind: input, shape index: {}]   ;;  %s3098_s1 = inlined_call_operand.hbm [shape: f32[2,1,16], index: 1, kind: input, shape index: {}]   ;;  %s3099_s2 = inlined_call_operand.vmem [shape: f32[16,128], index: 2, kind: input, shape index: {}]   ;;  %s3100_s3 = inlined_call_operand.hbm [shape: bf16[32,32], index: 3, kind: input, shape index: {}]   ;;  %s3101_s4 = inlined_call_operand.hbm [shape: bf16[32,64], index: 4, kind: input, shape index: {}]   ;;  %s3102_s5 = inlined_call_operand.hbm [shape: bf16[4,8,32], index: 5, kind: input, shape index: {}]   ;;  %s3103_s6 = inlined_call_operand.hbm [shape: bf16[32,64], index: 6, kind: input, shape index: {}]   ;;  %s3104_s7 = inlined_call_operand.vmem [shape: bf16[64,32], index: 7, kind: input, shape index: {}]   ;;  %s3105_s8 = inlined_call_operand.hbm [shape: f32[2,16,32], index: 8, kind: output, shape index: {}]  }
   0x1   :  { %3113 = sst [smem:[#allocation20_spill]] %s3099_s2 }
   0x2   :  { %3114 = sst [smem:[#allocation21_spill]] %s3100_s3 }
   0x3   :  { %3115 = sst [smem:[#allocation22_spill]] %s3101_s4 }
   0x4   :  { %3116 = sst [smem:[#allocation23_spill]] %s3102_s5 }
   0x5   :  { %3117 = sst [smem:[#allocation24_spill]] %s3103_s6 }
   0x6   :  { %3118 = sst [smem:[#allocation25_spill]] %s3104_s7 }
   0x7   :  { %3119 = sst [smem:[#allocation26_spill]] %s3105_s8 }
   0x8   :  { %13 = vsyncpa [#allocation5], 0 }
   0x9   :  { %15 = vsyncpa [#allocation5 + $0x1], 0 }
   0xa   :  { %16 = vsyncpa [#allocation8], 0 }
   0xb   :  { %17 = vsyncpa [#allocation11], 0 }
   0xc   :  { %18 = vsyncpa [#allocation6], 0 }
   0xd   :  { %20 = vsyncpa [#allocation6 + $0x1], 0  ;;  %s2548_s27 = smov 0   ;;  %s2550_s28 = smov 0  }
   0xe   :  { %s2552_s29 = smov 0   ;;  %s2554_s30 = smov 0  }
   0xf   :  { %s2556_s9 = smov 0   ;;  %s2558_s10 = smov 0  }
  0x10   :  { %s2560_s11 = smov 0   ;;  %s2562_s12 = smov 0  }
  0x11   :  { %s2564_s13 = smov 0   ;;  %s2566_s14 = smov 0  }
  0x12   :  { %s2568_s15 = smov 0  }
  0x13 LB: > { %3120 = sst [smem:[#allocation18_spill]] %s2466_s11  ;;  %s1829_s16 = sadd.s32 4294967295, %s2482_s15   ;;  %s2482_s15 = sphi %s2568_s15, %s26_s15   ;;  %s2478_s14 = sphi %s2566_s14, %s3151_s14   ;;  %s2474_s13 = sphi %s2564_s13, %s3150_s13   ;;  %s2470_s12 = sphi %s2562_s12, %s3149_s12   ;;  %s2466_s11 = sphi %s2560_s11, %s3148_s11   ;;  %s2462_s10 = sphi %s2558_s10, %s3147_s10   ;;  %s2458_s9 = sphi %s2556_s9, %s3146_s9   ;;  %s2454_s30 = sphi %s2554_s30, %s3145_s30   ;;  %s2450_s29 = sphi %s2552_s29, %s3144_s29   ;;  %s2446_s28 = sphi %s2550_s28, %s3143_s28   ;;  %s2442_s27 = sphi %s2548_s27, %s3142_s27  }
  0x14   : > { %p1831_p0 = scmp.ge.s32.totalorder %s2482_s15, 1  ;;  %p2605_p1 = scmp.eq.s32.totalorder %s1829_s16, 0 }
  0x15   : > { %p2609_p2 = scmp.eq.s32.totalorder %s1829_s16, 3  ;;  %p249_p3 = scmp.lt.s32.totalorder %s2482_s15, 5 }
  0x16   : > { %s3123_s3 = sld [smem:[#allocation21_spill]]  ;;  %s2484_s23 = smov [#allocation7]  }
  0x17   : > { %p2617_p4 = pnand %p1831_p0, %p249_p3  ;;  %s265_s24 = sshll.u32 %s2484_s23, 4  ;;  %s266_s24 = int_to_ptr.vmem [resolvable:$true] %s265_s24 }
  0x18   : > { %s3126_s5 = sld [smem:[#allocation23_spill]]  ;;  %s2485_s20 = smov [#allocation10]  }
  0x19   : > { %p1979_p5 = pneg %p2617_p4  ;;  %s2486_s8 = smov 64  }
  0x1a   : > { %s2487_s23 = smov 4   ;;  %s3127_s4 = sld [smem:[#allocation22_spill]] }
  0x1b   : > { %p2625_p6 = pnand %p1979_p5, %p2605_p1  ;;  %s2488_s16 = smov [#allocation9]  }
  0x1c   : > { %s263_s21 = sshll.u32 %s3123_s3, 4  ;;  %s293_s3 = sshll.u32 %s2485_s20, 4  ;;  %s264_s21 = int_to_ptr.hbm [resolvable:$true] %s263_s21  ;;  %s294_s3 = int_to_ptr.vmem [resolvable:$true] %s293_s3 }
  0x1d   : > { %1982 = dma.hbm_to_vmem [thread:$0]  (!%p2625_p6), %s264_s21, 256, %s266_s24, [#allocation8], %s2486_s8, %s2486_s8, %s2487_s23  }
  0x1e   : > { %s291_s19 = sshll.u32 %s3126_s5, 4  ;;  %s279_s20 = sshll.u32 %s2488_s16, 4  ;;  %s292_s19 = int_to_ptr.hbm [resolvable:$true] %s291_s19  ;;  %s280_s20 = int_to_ptr.vmem [resolvable:$true] %s279_s20 }
  0x1f   : > { %1988 = dma.hbm_to_vmem [thread:$0]  (!%p2625_p6), %s292_s19, 256, %s294_s3, [#allocation11], %s2486_s8, %s2486_s8, %s2487_s23  }
  0x20   : > { %s277_s26 = sshll.u32 %s3127_s4, 4  ;;  %s3128_s6 = sld [smem:[#allocation24_spill]]  ;;  %s278_s26 = int_to_ptr.hbm [resolvable:$true] %s277_s26 }
  0x21   : > { %1985 = dma.hbm_to_vmem [thread:$0]  (!%p2625_p6), %s278_s26, 256, %s280_s20, [#allocation8], %s2486_s8, %s2486_s8, %s2487_s23  }
  0x22   : > { %s2489_s2 = smov [#allocation12]   ;;  %s1830_s7 = sadd.s32 4294967294, %s2482_s15  }
  0x23   : > { %s307_s3 = sshll.u32 %s2489_s2, 4  ;;  %s35_s5 = sadd.s32 1, %s2474_s13  ;;  %s308_s3 = int_to_ptr.vmem [resolvable:$true] %s307_s3 }
  0x24   : > { %s38_s11 = sadd.s32 1, %s2478_s14  ;;  %p36_p7 = scmp.ge.s32.totalorder %s35_s5, 2 }
  0x25   : > { %s71_s24 = sadd.s32 1, %s2462_s10  ;;  %p78_p8 = scmp.ne.s32.totalorder %s2462_s10, %s2458_s9 }
  0x26   : > { %s305_s21 = sshll.u32 %s3128_s6, 4  ;;  %p79_p9 = scmp.eq.s32.totalorder %s2482_s15, 0  ;;  %s306_s21 = int_to_ptr.hbm [resolvable:$true] %s305_s21 }
  0x27   : > { %1991 = dma.hbm_to_vmem [thread:$0]  (!%p2625_p6), %s306_s21, 256, %s308_s3, [#allocation11], %s2486_s8, %s2486_s8, %s2487_s23  }
  0x28   : > { %s3153_s5 = smov (%p36_p7, %s35_s5), 0  ;;  %s3155_s11 = smov (!%p36_p7, %s38_s11), %s2478_s14 }
  0x29   : > { %p2656_p10 = por %p79_p9, %p78_p8  ;;  %p84_p11 = scmp.ne.s32.totalorder %s2458_s9, %s2454_s30 }
  0x2a   : > { %p40_p12 = scmp.ge.s32.totalorder %s3155_s11, 2  ;;  %s221_s25 = ssub.s32 %s2474_s13, %s3153_s5 }
  0x2b   : > { %p2666_p13 = por %p2605_p1, %p84_p11  ;;  %s225_s23 = sadd.s32 1, %s2450_s29 }
  0x2c   : > { %s3157_s11 = smov (%p40_p12, %s3155_s11), 0  ;;  %p235_p0 = scmp.ne.s32.totalorder %s2450_s29, %s2446_s28 }
  0x2d   : > { %3131 = sst [smem:[#allocation19_spill]] %s3157_s11  ;;  %p241_p3 = scmp.ne.s32.totalorder %s2446_s28, %s2442_s27 }
  0x2e   : > { %s68_s26 = ssub.s32 %s2478_s14, %s3157_s11  ;;  %p242_p5 = scmp.eq.s32.totalorder %s1830_s7, 3 }
  0x2f   : > { %p69_p6 = scmp.eq.s32.totalorder %s68_s26, 0  ;;  %s222_s30 = sor.u32 %s221_s25, %s68_s26 }
  0x30   : > { %p223_p7 = scmp.eq.s32.totalorder %s222_s30, 0  ;;  %p2681_p8 = por %p2609_p2, %p235_p0 }
  0x31   : > { %s2686_s20 = scalar_select %p69_p6, %s2462_s10, %s71_s24  }
  0x32   : > { %s2689_s21 = scalar_select %p223_p7, %s2450_s29, %s225_s23  }
  0x33   : > { %p2691_p9 = por %p242_p5, %p241_p3  ;;  %p2004_p11 = scmp.lt.s32.totalorder %s2482_s15, 4 }
  0x34   : > { %s332_s3 = sand.u32 1, %s2462_s10   ;;  %s338_s25 = scalar_lea.hbm %s3098_s1, %s2478_s14 }
  0x35   : > { %s340_s26 = sshll.u32 %s338_s25, 4  ;;  %s335_s18 = scalar_lea.vmem [#allocation4], %s332_s3  ;;  %s341_s26 = int_to_ptr.hbm [resolvable:$true] %s340_s26 }
  0x36   : > { %s342_s30 = sshll.u32 %s335_s18, 4  ;;  %p1993_p2 = pnand %p2004_p11, %p2656_p10  ;;  %s343_s30 = int_to_ptr.vmem [resolvable:$true] %s342_s30 }
  0x37   : > { %s333_s24 = scalar_lea.sflag [#allocation5], %s332_s3  ;;  %351 = sbr.rel (%p2617_p4) target bundleno = 2288 (0x8f0), region = 52 }
  0x38   : > { %1995 = dma.hbm_to_vmem [thread:$0]  (!%p1993_p2), %s341_s26, 16, %s343_s30, %s333_s24  }
  0x39   : > { %s353_s23 = sand.u32 (!%p2617_p4), 1, %s2458_s9  }
  0x3a   : > { %s354_s6 = scalar_lea.sflag (!%p2617_p4), [#allocation5], %s353_s23  ;;  %s2706_s11 = scalar_lea.vmem (!%p2617_p4), [#allocation4], %s353_s23 }
  0x3c   : > { %2425 = dma.done.wait (%p2666_p13), %s354_s6, 16  }
  0x3d   : > { %2427 = vsyncadd (%p2666_p13), %s354_s6, 4294967280 }
  0x3e   : > { %2429 = dma.done.wait (%p2605_p1), [#allocation8], 512  }
  0x3f   : > { %2431 = vsyncadd (%p2605_p1), [#allocation8], 4294966784 }
  0x40   : > { %2433 = dma.done.wait (%p2605_p1), [#allocation11], 512  }
  0x41   : > { %2435 = vsyncadd (%p2605_p1), [#allocation11], 4294966784  ;;  %s3112_s4 = sand.u32 1, %s2446_s28   ;;  %p414_p4 = scmp.lt.s32.totalorder %s2470_s12, 1 }
  0x42   : > { %s2724_s6 = sshll.u32 %s3112_s4, 3  ;;  %s3134_s17 = sld [smem:[#allocation18_spill]] }
  0x43   : > { %s415_s22 = scalar_select %p414_p4, %s2470_s12, 1 }
  0x44   : > { %s413_s25 = scalar_lea.vmem [#allocation13], %s2724_s6 }
  0x45   : > { %s1940_s8 = sshll.u32 %s415_s22, 4 }
  0x46   : > { %s2730_s7 = scalar_lea.vmem %s3097_s0, %s1940_s8 }
  0x48   : > { %p1845_p1 = scmp.ne.s32.totalorder %s3134_s17, 0 }
  0x49   : > { %s3135_s30 = sld [smem:[#allocation20_spill]] (!%p1845_p1)  ;;  %s2490_s24 = smov (!%p1845_p1), 32  }
  0x4a   : > { %423 = sbr.rel (%p1845_p1) target bundleno = 501 (0x1f5), region = 76  ;;  %s2491_s8 = smov (!%p1845_p1), 120  }
  0x4b   : > { %s2492_s19 = smov (!%p1845_p1), 112   ;;  %s2493_s3 = smov (!%p1845_p1), 104  }
  0x4c   : > { %s2494_s17 = smov (!%p1845_p1), 96  }
  0x4f   : > { %v1942_v0 = vld [vmem:[#allocation9 + $0x8] sm:$0xff]  ;;  %v1941_v1 = vld [vmem:[#allocation9] sm:$0xff]  ;;  %v2167_v2 = vld [vmem:[%s3135_s30 + $0x2] ss:$0 sm:$0xff]  ;;  %vm443_vm0 = vcmask 261120   ;;  %vm494_vm1 = vcmask 1047556  }
  0x50   : > { %453 = vmatpush.bf16.msra.mxu0 %v1942_v0  ;;  %v424_v3 = vld [vmem:[%s2730_s7] sm:$0xff]  ;;  %v425_v4 = vld [vmem:[%s2730_s7 + $0x8] sm:$0xff]  ;;  %468 = vrot.lane.b32.xlu0 %v2167_v2, %s2490_s24  ;;  %v2495_v22 = vmov 1983009808   ;;  %v2496_v36 = vmov 1934713408  }
  0x51   : > { %v426_v5 = vpack.c.bf16 %v425_v4, %v424_v3  ;;  %v2168_v7 = vld [vmem:[%s3135_s30 + $0x1] ss:$0 sm:$0xff]  ;;  %v499_v23 = vunpack.c.l.s4 %v2495_v22  ;;  %v523_v37 = vunpack.c.l.s4 %v2496_v36  ;;  %vm722_vm2 = vcmask 60416  }
  0x53   : > { %v2744_v29 = vunpack.c.0.s8 %v499_v23  ;;  %v2754_v48 = vunpack.c.0.s8 %v523_v37 }
  0x54   : > { %454 = vmatpush.bf16.msra.mxu0 %v1941_v1 }
  0x57   : > { %1854 = vmatmul.msk.bf16.vlgmr.msra.gmra.mxu0 %vm443_vm0, %v426_v5 }
  0xc2   : > { %v469_v8 = vpop.permute.xlu0 %468 }
  0xd4   : > { %v456_v6 = vpop.f32.mrf.mxu0 }
  0xd5   : > { %v463_v10 = vadd.f32 %v2168_v7, %v456_v6  ;;  %v471_v11 = vadd.f32 %v469_v8, %v456_v6 }
  0xd7   : > { %v496_v27 = vrot.slane %v463_v10, 4 }
  0xdc   : > { %v458_v9 = vpop.f32.mrf.mxu0 }
  0xdd   : > { %v464_v12 = vadd.f32 %v2168_v7, %v458_v9  ;;  %v472_v13 = vadd.f32 %v469_v8, %v458_v9 }
  0xdf   : > { %v2122_v14 = vpack.i.bf16 %v472_v13, %v471_v11  ;;  %v2132_v15 = vpack.i.bf16 %v464_v12, %v463_v10  ;;  %v552_v31 = vrot.slane %v464_v12, 4 }
  0xe1   : > { %2123 = vrot.lane.b32.xlu1 %v2122_v14, %s2491_s8  ;;  %2118 = vrot.lane.b32.xlu0 %v2122_v14, %s2492_s19 }
  0xe2   : > { %2133 = vrot.lane.b32.xlu2 %v2132_v15, %s2492_s19 }
  0xe9   : > { %2128 = vrot.lane.b32.xlu1 %v2122_v14, %s2493_s3 }
  0xea   : > { %2138 = vrot.lane.b32.xlu2 %v2122_v14, %s2494_s17 }
  0xf1   : > { %2143 = vrot.lane.b32.xlu1 %v2132_v15, %s2491_s8 }
  0xf2   : > { %2153 = vrot.lane.b32.xlu2 %v2132_v15, %s2493_s3 }
 0x13c   : > { %v2134_v16 = vpop.permute.xlu2 %2133 }
 0x13d   : > { %v2136_v20 = vunpack.i.h.bf16 %v2134_v16  ;;  %v2135_v21 = vunpack.i.l.bf16 %v2134_v16 }
 0x13f   : > { %v550_v25 = vrot.slane %v2136_v20, 4  ;;  %v493_v26 = vrot.slane %v2135_v21, 4  ;;  %v497_v30 = vsel %vm494_vm1, %v2135_v21, %v496_v27  ;;  %v553_v38 = vsel %vm494_vm1, %v2136_v20, %v552_v31 }
 0x140   : > { %v505_v41 = vperm.slane %v497_v30, %v2744_v29  ;;  %v561_v47 = vperm.slane %v553_v38, %v2744_v29 }
 0x141   : > { %v551_v32 = vsel %vm494_vm1, %v550_v25, %v464_v12  ;;  %v495_v33 = vsel %vm494_vm1, %v493_v26, %v463_v10 }
 0x142   : > { %v557_v39 = vperm.slane %v551_v32, %v2744_v29  ;;  %v501_v40 = vperm.slane %v495_v33, %v2744_v29  ;;  %v532_v57 = vrot.slane %v505_v41, 4  ;;  %v588_v0 = vrot.slane %v561_v47, 4 }
 0x144   : > { %v2742_v17 = vpop.permute.xlu2 %2138  ;;  %v520_v53 = vrot.slane %v501_v40, 4  ;;  %v576_v56 = vrot.slane %v557_v39, 4 }
 0x14c   : > { %v2154_v28 = vpop.permute.xlu2 %2153 }
 0x14d   : > { %v2156_v34 = vunpack.i.h.bf16 %v2154_v28  ;;  %v2155_v35 = vunpack.i.l.bf16 %v2154_v28 }
 0x14f   : > { %v562_v43 = vrot.slane %v2156_v34, 4  ;;  %v506_v44 = vrot.slane %v2155_v35, 4 }
 0x153   : > { %v2124_v18 = vpop.permute.xlu1 %2123  ;;  %v2119_v19 = vpop.permute.xlu0 %2118 }
 0x154   : > { %2148 = vrot.lane.b32.xlu0 %v2119_v19, %s2494_s17 }
 0x15b   : > { %v2129_v24 = vpop.permute.xlu1 %2128 }
 0x15c   : > { %2158 = vrot.lane.b32.xlu0 %v2124_v18, %s2494_s17  ;;  %2163 = vrot.lane.b32.xlu1 %v2129_v24, %s2494_s17 }
 0x163   : > { %v2144_v42 = vpop.permute.xlu1 %2143 }
 0x164   : > { %v2146_v45 = vunpack.i.h.bf16 %v2144_v42  ;;  %v2145_v46 = vunpack.i.l.bf16 %v2144_v42 }
 0x166   : > { %v564_v49 = vrot.slane %v2146_v45, 4  ;;  %v507_v50 = vsel %vm494_vm1, %v506_v44, %v2145_v46  ;;  %v508_v51 = vrot.slane %v2145_v46, 4  ;;  %v563_v52 = vsel %vm494_vm1, %v562_v43, %v2146_v45 }
 0x167   : > { %v513_v54 = vperm.slane %v507_v50, %v2744_v29  ;;  %v569_v55 = vperm.slane %v563_v52, %v2744_v29 }
 0x168   : > { %v509_v58 = vsel %vm494_vm1, %v2155_v35, %v508_v51  ;;  %v565_v59 = vsel %vm494_vm1, %v2156_v34, %v564_v49 }
 0x169   : > { %v517_v60 = vperm.slane %v509_v58, %v2744_v29  ;;  %v518_v61 = vrot.slane %v513_v54, 4  ;;  %v521_v62 = vsel %vm494_vm1, %v513_v54, %v520_v53  ;;  %v573_v63 = vperm.slane %v565_v59, %v2744_v29 }
 0x16a   : > { %v529_v1 = vperm.slane %v521_v62, %v2754_v48  ;;  %v574_v2 = vrot.slane %v569_v55, 4  ;;  %v577_v3 = vsel %vm494_vm1, %v569_v55, %v576_v56 }
 0x16b   : > { %v519_v4 = vsel %vm494_vm1, %v518_v61, %v501_v40  ;;  %v530_v5 = vrot.slane %v517_v60, 4  ;;  %v533_v6 = vsel %vm494_vm1, %v517_v60, %v532_v57  ;;  %v585_v7 = vperm.slane %v577_v3, %v2754_v48 }
 0x16c   : > { %v525_v8 = vperm.slane %v519_v4, %v2754_v48  ;;  %v541_v9 = vperm.slane %v533_v6, %v2754_v48  ;;  %v544_v10 = vrot.slane %v529_v1, 4  ;;  %v575_v11 = vsel %vm494_vm1, %v574_v2, %v557_v39 }
 0x16d   : > { %v531_v12 = vsel %vm494_vm1, %v530_v5, %v505_v41  ;;  %v581_v13 = vperm.slane %v575_v11, %v2754_v48  ;;  %v586_v14 = vrot.slane %v573_v63, 4  ;;  %v589_v15 = vsel %vm494_vm1, %v573_v63, %v588_v0 }
 0x16e   : > { %v537_v16 = vperm.slane %v531_v12, %v2754_v48  ;;  %v542_v18 = vrot.slane %v525_v8, 4  ;;  %v545_v19 = vsel %vm494_vm1, 0.0, %v544_v10  ;;  %v548_v20 = vrot.slane %v541_v9, 4 }
 0x16f   : > { %v587_v21 = vsel %vm494_vm1, %v586_v14, %v561_v47  ;;  %v597_v22 = vperm.slane %v589_v15, %v2754_v48  ;;  %v598_v23 = vrot.slane %v581_v13, 4  ;;  %v600_v24 = vrot.slane %v585_v7, 4 }
 0x170   : > { %v543_v25 = vsel %vm494_vm1, 0.0, %v542_v18  ;;  %v546_v26 = vrot.slane %v537_v16, 4  ;;  %v549_v27 = vsel %vm494_vm1, 0.0, %v548_v20  ;;  %v593_v28 = vperm.slane %v587_v21, %v2754_v48 }
 0x171   : > { %v599_v30 = vsel %vm494_vm1, 0.0, %v598_v23  ;;  %v601_v31 = vsel %vm494_vm1, 0.0, %v600_v24  ;;  %v604_v32 = vrot.slane %v597_v22, 4  ;;  %v606_v33 = vsel %vm494_vm1, %v544_v10, %v525_v8 }
 0x172   : > { %v547_v34 = vsel %vm494_vm1, 0.0, %v546_v26  ;;  %v602_v35 = vrot.slane %v593_v28, 4  ;;  %v610_v36 = vperm.slane %v606_v33, %v2744_v29  ;;  %v611_v37 = vrot.slane %v545_v19, 4 }
 0x173   : > { %v605_v38 = vsel %vm494_vm1, 0.0, %v604_v32  ;;  %v617_v39 = vsel %vm494_vm1, %v548_v20, %v537_v16  ;;  %v622_v40 = vrot.slane %v549_v27, 4  ;;  %v660_v41 = vsel %vm494_vm1, %v600_v24, %v581_v13 }
 0x174   : > { %v603_v42 = vsel %vm494_vm1, 0.0, %v602_v35  ;;  %v612_v43 = vsel %vm494_vm1, %v611_v37, %v543_v25  ;;  %v621_v44 = vperm.slane %v617_v39, %v2744_v29  ;;  %v630_v45 = vrot.slane %v610_v36, 4 }
 0x175   : > { %v616_v46 = vperm.slane %v612_v43, %v2744_v29  ;;  %v623_v47 = vsel %vm494_vm1, %v622_v40, %v547_v34  ;;  %v664_v49 = vperm.slane %v660_v41, %v2744_v29  ;;  %v665_v50 = vrot.slane %v601_v31, 4 }
 0x176   : > { %v627_v51 = vperm.slane %v623_v47, %v2744_v29  ;;  %v642_v52 = vrot.slane %v621_v44, 4  ;;  %v671_v53 = vsel %vm494_vm1, %v604_v32, %v593_v28  ;;  %v676_v54 = vrot.slane %v605_v38, 4 }
 0x177   : > { %v628_v55 = vrot.slane %v616_v46, 4  ;;  %v631_v56 = vsel %vm494_vm1, %v616_v46, %v630_v45  ;;  %v666_v57 = vsel %vm494_vm1, %v665_v50, %v599_v30  ;;  %v675_v58 = vperm.slane %v671_v53, %v2744_v29 }
 0x178   : > { %v639_v59 = vperm.slane %v631_v56, %v2754_v48  ;;  %v640_v60 = vrot.slane %v627_v51, 4  ;;  %v643_v61 = vsel %vm494_vm1, %v627_v51, %v642_v52  ;;  %v670_v62 = vperm.slane %v666_v57, %v2744_v29 }
 0x179   : > { %v629_v63 = vsel %vm494_vm1, %v628_v55, %v610_v36  ;;  %v651_v0 = vperm.slane %v643_v61, %v2754_v48  ;;  %v677_v1 = vsel %vm494_vm1, %v676_v54, %v603_v42  ;;  %v684_v2 = vrot.slane %v664_v49, 4 }
 0x17a   : > { %v635_v3 = vperm.slane %v629_v63, %v2754_v48  ;;  %v641_v4 = vsel %vm494_vm1, %v640_v60, %v621_v44  ;;  %v658_v5 = vrot.slane %v639_v59, 4  ;;  %v681_v6 = vperm.slane %v677_v1, %v2744_v29 }
 0x17b   : > { %v647_v7 = vperm.slane %v641_v4, %v2754_v48  ;;  %v656_v8 = vrot.slane %v651_v0, 4  ;;  %v682_v9 = vrot.slane %v670_v62, 4  ;;  %v685_v10 = vsel %vm494_vm1, %v670_v62, %v684_v2 }
 0x17c   : > { %v654_v11 = vrot.slane %v635_v3, 4  ;;  %v659_v12 = vsel %vm494_vm1, %v651_v0, %v658_v5  ;;  %v693_v13 = vperm.slane %v685_v10, %v2754_v48  ;;  %v694_v14 = vrot.slane %v681_v6, 4 }
 0x17d   : > { %v652_v15 = vrot.slane %v647_v7, 4  ;;  %v657_v16 = vsel %vm494_vm1, %v656_v8, %v639_v59  ;;  %v683_v18 = vsel %vm494_vm1, %v682_v9, %v664_v49  ;;  %v696_v19 = vrot.slane %v675_v58, 4 }
 0x17e   : > { %v655_v20 = vsel %vm494_vm1, %v647_v7, %v654_v11  ;;  %v689_v21 = vperm.slane %v683_v18, %v2754_v48  ;;  %v695_v22 = vsel %vm494_vm1, %v694_v14, %v675_v58  ;;  %v712_v23 = vrot.slane %v693_v13, 4 }
 0x17f   : > { %v653_v24 = vsel %vm494_vm1, %v652_v15, %v635_v3  ;;  %v697_v25 = vsel %vm494_vm1, %v681_v6, %v696_v19  ;;  %v701_v26 = vperm.slane %v695_v22, %v2754_v48  ;;  %v716_v27 = vpack.c.bf16 %v655_v20, %v655_v20 }
 0x180   : > { %v705_v28 = vperm.slane %v697_v25, %v2754_v48  ;;  %v708_v30 = vrot.slane %v689_v21, 4  ;;  %v714_v31 = vpack.c.bf16 %v653_v24, %v653_v24  ;;  %v718_v32 = vpack.c.bf16 %v657_v16, %v657_v16 }
 0x181   : > { %v706_v33 = vrot.slane %v701_v26, 4  ;;  %v720_v34 = vpack.c.bf16 %v659_v12, %v659_v12  ;;  %725 = vst.msk [vmem:[#allocation2 + $0x8] sm:$0xf] %vm722_vm2, %v716_v27  ;;  %v2141_v45 = vunpack.i.h.bf16 %v2742_v17  ;;  %v2140_v46 = vunpack.i.l.bf16 %v2742_v17 }
 0x182   : > { %v709_v35 = vsel %vm494_vm1, %v701_v26, %v708_v30  ;;  %v710_v36 = vrot.slane %v705_v28, 4  ;;  %v713_v37 = vsel %vm494_vm1, %v705_v28, %v712_v23  ;;  %723 = vst.msk [vmem:[#allocation2] sm:$0xf] %vm722_vm2, %v714_v31 }
 0x183   : > { %v707_v38 = vsel %vm494_vm1, %v706_v33, %v689_v21  ;;  %v717_v39 = vpack.c.bf16 %v709_v35, %v709_v35  ;;  %727 = vst.msk [vmem:[#allocation2 + $0x10] sm:$0xf] %vm722_vm2, %v718_v32  ;;  %v721_v42 = vpack.c.bf16 %v713_v37, %v713_v37  ;;  %v827_v52 = vrot.slane %v2141_v45, 4 }
 0x184   : > { %v711_v40 = vsel %vm494_vm1, %v710_v36, %v693_v13  ;;  %v715_v41 = vpack.c.bf16 %v707_v38, %v707_v38  ;;  %729 = vst.msk [vmem:[#allocation2 + $0x18] sm:$0xf] %vm722_vm2, %v720_v34  ;;  %v771_v53 = vrot.slane %v2140_v46, 4 }
 0x185   : > { %v719_v43 = vpack.c.bf16 %v711_v40, %v711_v40  ;;  %726 = vst.msk [vmem:[#allocation2 + $0xc] sm:$0xf] %vm722_vm2, %v717_v39 }
 0x186   : > { %724 = vst.msk [vmem:[#allocation2 + $0x4] sm:$0xf] %vm722_vm2, %v715_v41 }
 0x187   : > { %728 = vst.msk [vmem:[#allocation2 + $0x14] sm:$0xf] %vm722_vm2, %v719_v43 }
 0x188   : > { %730 = vst.msk [vmem:[#allocation2 + $0x1c] sm:$0xf] %vm722_vm2, %v721_v42 }
 0x1c6   : > { %v2149_v44 = vpop.permute.xlu0 %2148 }
 0x1c7   : > { %v2151_v47 = vunpack.i.h.bf16 %v2149_v44  ;;  %v2150_v49 = vunpack.i.l.bf16 %v2149_v44 }
 0x1c9   : > { %v825_v50 = vrot.slane %v2151_v47, 4  ;;  %v769_v51 = vrot.slane %v2150_v49, 4  ;;  %v772_v55 = vsel %vm494_vm1, %v2150_v49, %v771_v53  ;;  %v828_v57 = vsel %vm494_vm1, %v2151_v47, %v827_v52 }
 0x1ca   : > { %v780_v0 = vperm.slane %v772_v55, %v2744_v29  ;;  %v836_v2 = vperm.slane %v828_v57, %v2744_v29 }
 0x1cb   : > { %v770_v54 = vsel %vm494_vm1, %v769_v51, %v2140_v46  ;;  %v826_v56 = vsel %vm494_vm1, %v825_v50, %v2141_v45 }
 0x1cc   : > { %v776_v58 = vperm.slane %v770_v54, %v2744_v29  ;;  %v832_v1 = vperm.slane %v826_v56, %v2744_v29  ;;  %v807_v16 = vrot.slane %v780_v0, 4  ;;  %v863_v19 = vrot.slane %v836_v2, 4 }
 0x1ce   : > { %v2159_v59 = vpop.permute.xlu0 %2158  ;;  %v2164_v60 = vpop.permute.xlu1 %2163  ;;  %v795_v7 = vrot.slane %v776_v58, 4  ;;  %v851_v18 = vrot.slane %v832_v1, 4 }
 0x1cf   : > { %v2161_v61 = vunpack.i.h.bf16 %v2159_v59  ;;  %v2160_v17 = vunpack.i.l.bf16 %v2159_v59  ;;  %v2166_v62 = vunpack.i.h.bf16 %v2164_v60  ;;  %v2165_v63 = vunpack.i.l.bf16 %v2164_v60 }
 0x1d1   : > { %v839_v3 = vrot.slane %v2161_v61, 4  ;;  %v783_v4 = vrot.slane %v2160_v17, 4  ;;  %v837_v5 = vrot.slane %v2166_v62, 4  ;;  %v781_v6 = vrot.slane %v2165_v63, 4 }
 0x1d3   : > { %v838_v8 = vsel %vm494_vm1, %v837_v5, %v2161_v61  ;;  %v840_v9 = vsel %vm494_vm1, %v2166_v62, %v839_v3  ;;  %v782_v10 = vsel %vm494_vm1, %v781_v6, %v2160_v17  ;;  %v784_v11 = vsel %vm494_vm1, %v2165_v63, %v783_v4 }
 0x1d4   : > { %v844_v12 = vperm.slane %v838_v8, %v2744_v29  ;;  %v848_v13 = vperm.slane %v840_v9, %v2744_v29  ;;  %v788_v14 = vperm.slane %v782_v10, %v2744_v29  ;;  %v792_v15 = vperm.slane %v784_v11, %v2744_v29 }
 0x1d6   : > { %v849_v20 = vrot.slane %v844_v12, 4  ;;  %v861_v21 = vrot.slane %v848_v13, 4  ;;  %v793_v22 = vrot.slane %v788_v14, 4  ;;  %v796_v23 = vsel %vm494_vm1, %v788_v14, %v795_v7 }
 0x1d7   : > { %v804_v24 = vperm.slane %v796_v23, %v2754_v48  ;;  %v805_v25 = vrot.slane %v792_v15, 4  ;;  %v808_v26 = vsel %vm494_vm1, %v792_v15, %v807_v16  ;;  %v852_v27 = vsel %vm494_vm1, %v844_v12, %v851_v18 }
 0x1d8   : > { %v794_v28 = vsel %vm494_vm1, %v793_v22, %v776_v58  ;;  %v816_v30 = vperm.slane %v808_v26, %v2754_v48  ;;  %v850_v31 = vsel %vm494_vm1, %v849_v20, %v832_v1  ;;  %v860_v32 = vperm.slane %v852_v27, %v2754_v48 }
 0x1d9   : > { %v800_v33 = vperm.slane %v794_v28, %v2754_v48  ;;  %v806_v34 = vsel %vm494_vm1, %v805_v25, %v780_v0  ;;  %v819_v35 = vrot.slane %v804_v24, 4  ;;  %v856_v36 = vperm.slane %v850_v31, %v2754_v48 }
 0x1da   : > { %v812_v37 = vperm.slane %v806_v34, %v2754_v48  ;;  %v823_v38 = vrot.slane %v816_v30, 4  ;;  %v862_v39 = vsel %vm494_vm1, %v861_v21, %v836_v2  ;;  %v864_v40 = vsel %vm494_vm1, %v848_v13, %v863_v19 }
 0x1db   : > { %v817_v41 = vrot.slane %v800_v33, 4  ;;  %v820_v42 = vsel %vm494_vm1, 0.0, %v819_v35  ;;  %v868_v43 = vperm.slane %v862_v39, %v2754_v48  ;;  %v872_v44 = vperm.slane %v864_v40, %v2754_v48 }
 0x1dc   : > { %v821_v45 = vrot.slane %v812_v37, 4  ;;  %v824_v46 = vsel %vm494_vm1, 0.0, %v823_v38  ;;  %v873_v47 = vrot.slane %v856_v36, 4  ;;  %v875_v49 = vrot.slane %v860_v32, 4 }
 0x1dd   : > { %v818_v50 = vsel %vm494_vm1, 0.0, %v817_v41  ;;  %v877_v51 = vrot.slane %v868_v43, 4  ;;  %v879_v52 = vrot.slane %v872_v44, 4  ;;  %v881_v53 = vsel %vm494_vm1, %v819_v35, %v800_v33 }
 0x1de   : > { %v822_v54 = vsel %vm494_vm1, 0.0, %v821_v45  ;;  %v874_v55 = vsel %vm494_vm1, 0.0, %v873_v47  ;;  %v876_v56 = vsel %vm494_vm1, 0.0, %v875_v49  ;;  %v885_v57 = vperm.slane %v881_v53, %v2744_v29 }
 0x1df   : > { %v878_v58 = vsel %vm494_vm1, 0.0, %v877_v51  ;;  %v880_v59 = vsel %vm494_vm1, 0.0, %v879_v52  ;;  %v886_v60 = vrot.slane %v820_v42, 4  ;;  %v892_v61 = vsel %vm494_vm1, %v823_v38, %v812_v37 }
 0x1e0   : > { %v896_v17 = vperm.slane %v892_v61, %v2744_v29  ;;  %v897_v62 = vrot.slane %v824_v46, 4  ;;  %v905_v63 = vrot.slane %v885_v57, 4  ;;  %v935_v0 = vsel %vm494_vm1, %v875_v49, %v856_v36 }
 0x1e1   : > { %v887_v1 = vsel %vm494_vm1, %v886_v60, %v818_v50  ;;  %v939_v2 = vperm.slane %v935_v0, %v2744_v29  ;;  %v940_v3 = vrot.slane %v876_v56, 4  ;;  %v946_v4 = vsel %vm494_vm1, %v879_v52, %v868_v43 }
 0x1e2   : > { %v891_v5 = vperm.slane %v887_v1, %v2744_v29  ;;  %v898_v6 = vsel %vm494_vm1, %v897_v62, %v822_v54  ;;  %v917_v7 = vrot.slane %v896_v17, 4  ;;  %v950_v8 = vperm.slane %v946_v4, %v2744_v29 }
 0x1e3   : > { %v902_v9 = vperm.slane %v898_v6, %v2744_v29  ;;  %v941_v10 = vsel %vm494_vm1, %v940_v3, %v874_v55  ;;  %v951_v11 = vrot.slane %v880_v59, 4  ;;  %v959_v12 = vrot.slane %v939_v2, 4 }
 0x1e4   : > { %v903_v13 = vrot.slane %v891_v5, 4  ;;  %v906_v14 = vsel %vm494_vm1, %v891_v5, %v905_v63  ;;  %v945_v15 = vperm.slane %v941_v10, %v2744_v29  ;;  %v971_v16 = vrot.slane %v950_v8, 4 }
 0x1e5   : > { %v914_v18 = vperm.slane %v906_v14, %v2754_v48  ;;  %v915_v19 = vrot.slane %v902_v9, 4  ;;  %v918_v20 = vsel %vm494_vm1, %v902_v9, %v917_v7  ;;  %v952_v21 = vsel %vm494_vm1, %v951_v11, %v878_v58 }
 0x1e6   : > { %v904_v22 = vsel %vm494_vm1, %v903_v13, %v885_v57  ;;  %v926_v23 = vperm.slane %v918_v20, %v2754_v48  ;;  %v956_v24 = vperm.slane %v952_v21, %v2744_v29  ;;  %v957_v25 = vrot.slane %v945_v15, 4 }
 0x1e7   : > { %v910_v26 = vperm.slane %v904_v22, %v2754_v48  ;;  %v916_v27 = vsel %vm494_vm1, %v915_v19, %v896_v17  ;;  %v960_v28 = vsel %vm494_vm1, %v945_v15, %v959_v12  ;;  %v933_v35 = vrot.slane %v914_v18, 4 }
 0x1e8   : > { %v922_v30 = vperm.slane %v916_v27, %v2754_v48  ;;  %v931_v31 = vrot.slane %v926_v23, 4  ;;  %v958_v32 = vsel %vm494_vm1, %v957_v25, %v939_v2  ;;  %v968_v33 = vperm.slane %v960_v28, %v2754_v48 }
 0x1e9   : > { %v929_v34 = vrot.slane %v910_v26, 4  ;;  %v964_v36 = vperm.slane %v958_v32, %v2754_v48  ;;  %v969_v37 = vrot.slane %v956_v24, 4  ;;  %v972_v39 = vsel %vm494_vm1, %v956_v24, %v971_v16 }
 0x1ea   : > { %v927_v29 = vrot.slane %v922_v30, 4  ;;  %v932_v38 = vsel %vm494_vm1, %v931_v31, %v914_v18  ;;  %v987_v40 = vrot.slane %v968_v33, 4  ;;  %v980_v43 = vperm.slane %v972_v39, %v2754_v48 }
 0x1eb   : > { %v930_v41 = vsel %vm494_vm1, %v922_v30, %v929_v34  ;;  %v970_v42 = vsel %vm494_vm1, %v969_v37, %v950_v8  ;;  %v983_v44 = vrot.slane %v964_v36, 4  ;;  %v993_v49 = vpack.c.bf16 %v932_v38, %v932_v38 }
 0x1ec   : > { %v928_v45 = vsel %vm494_vm1, %v927_v29, %v910_v26  ;;  %v976_v46 = vperm.slane %v970_v42, %v2754_v48  ;;  %v991_v47 = vpack.c.bf16 %v930_v41, %v930_v41  ;;  %v934_v50 = vsel %vm494_vm1, %v926_v23, %v933_v35 }
 0x1ed   : > { %v985_v51 = vrot.slane %v980_v43, 4  ;;  %v989_v52 = vpack.c.bf16 %v928_v45, %v928_v45  ;;  %v988_v55 = vsel %vm494_vm1, %v980_v43, %v987_v40  ;;  %v995_v59 = vpack.c.bf16 %v934_v50, %v934_v50  ;;  %1001 = vst.msk [vmem:[#allocation3 + $0x10] sm:$0xf] %vm722_vm2, %v993_v49 }
 0x1ee   : > { %v981_v53 = vrot.slane %v976_v46, 4  ;;  %v984_v54 = vsel %vm494_vm1, %v976_v46, %v983_v44  ;;  %999 = vst.msk [vmem:[#allocation3 + $0x8] sm:$0xf] %vm722_vm2, %v991_v47  ;;  %v996_v61 = vpack.c.bf16 %v988_v55, %v988_v55 }
 0x1ef   : > { %v986_v56 = vsel %vm494_vm1, %v985_v51, %v968_v33  ;;  %v992_v57 = vpack.c.bf16 %v984_v54, %v984_v54  ;;  %997 = vst.msk [vmem:[#allocation3] sm:$0xf] %vm722_vm2, %v989_v52 }
 0x1f0   : > { %v982_v48 = vsel %vm494_vm1, %v981_v53, %v964_v36  ;;  %v994_v58 = vpack.c.bf16 %v986_v56, %v986_v56  ;;  %1003 = vst.msk [vmem:[#allocation3 + $0x18] sm:$0xf] %vm722_vm2, %v995_v59 }
 0x1f1   : > { %v990_v60 = vpack.c.bf16 %v982_v48, %v982_v48  ;;  %1000 = vst.msk [vmem:[#allocation3 + $0xc] sm:$0xf] %vm722_vm2, %v992_v57 }
 0x1f2   : > { %1002 = vst.msk [vmem:[#allocation3 + $0x14] sm:$0xf] %vm722_vm2, %v994_v58 }
 0x1f3   : > { %998 = vst.msk [vmem:[#allocation3 + $0x4] sm:$0xf] %vm722_vm2, %v990_v60 }
 0x1f4   : > { %1004 = vst.msk [vmem:[#allocation3 + $0x1c] sm:$0xf] %vm722_vm2, %v996_v61 }
 0x1f5 PF: > { %v1944_v17 = vld [vmem:[#allocation7 + $0x8] sm:$0xff]  ;;  %s3136_s26 = sld [smem:[#allocation18_spill]]  ;;  %v1943_v62 = vld [vmem:[#allocation7] sm:$0xff]  ;;  %vm1028_vm3 = vcmask 261120   ;;  %s2497_s8 = smov 120   ;;  %vm1186_vm4 = vcmask 64512  }
 0x1f6   : > { %1038 = vmatpush.bf16.msra.mxu0 %v1944_v17  ;;  %s3137_s22 = sld [smem:[#allocation20_spill]]  ;;  %s2498_s19 = smov 112   ;;  %v1947_v5 = vld [vmem:[#allocation2 + $0x10] sm:$0xff]  ;;  %v1945_v6 = vld [vmem:[#allocation2] sm:$0xff]  ;;  %v1948_v7 = vld [vmem:[#allocation2 + $0x18] sm:$0xff]  ;;  %vm1056_vm5 = vcmask 1047556  }
 0x1f7   : > { %v1946_v8 = vld [vmem:[#allocation2 + $0x8] sm:$0xff]  ;;  %v1239_v9 = vsel %vm1186_vm4, %v1947_v5, 0  ;;  %v1191_v10 = vsel %vm1186_vm4, %v1945_v6, 0  ;;  %v1263_v11 = vsel %vm1186_vm4, %v1948_v7, 0  ;;  %v2500_v13 = vmov 1983009808  }
 0x1f8   : > { %1248 = vmatpush.bf16.xpose.msra.mxu3 %v1239_v9  ;;  %1200 = vmatpush.bf16.xpose.msra.mxu1 %v1191_v10  ;;  %v1215_v12 = vsel %vm1186_vm4, %v1946_v8, 0  ;;  %v1061_v14 = vunpack.c.l.s4 %v2500_v13  ;;  %v2501_v23 = vmov 1934713408   ;;  %vm1278_vm6 = vcmask 130048   ;;  %s1936_s4 = sshll.u32 %s2470_s12, 1  ;;  %s3139_s24 = sld [smem:[#allocation26_spill]] }
 0x1f9   : > { %1224 = vmatpush.bf16.xpose.msra.mxu2 %v1215_v12  ;;  %v1085_v24 = vunpack.c.l.s4 %v2501_v23  ;;  %vm1434_vm7 = vcmask 1043456   ;;  %vm1633_vm12 = vcmask 523264  }
 0x1fa   : > { %1039 = vmatpush.bf16.msra.mxu0 %v1943_v62  ;;  %v1062_v19 = vunpack.c.0.s8 %v1061_v14 }
 0x1fb   : > { %s1855_s18 = sshll.u32 %s3136_s26, 3  ;;  %v1086_v30 = vunpack.c.0.s8 %v1085_v24 }
 0x1fc   : > { %s1006_s30 = scalar_lea.vmem %s2730_s7, %s1855_s18  ;;  %v2169_v1 = vld [vmem:[%s3137_s22] ss:$0 sm:$0xff]  ;;  %s2499_s7 = smov 104  }
 0x1fd   : > { %v2928_v63 = vld [vmem:[%s1006_s30] sm:$0xff] }
 0x1fe   : > { %v1009_v0 = vpack.c.bf16 %v2928_v63, %v2928_v63  ;;  %1272 = vmatpush.bf16.xpose.msrb.mxu0 %v1263_v11  ;;  %s2372_s30 = scalar_lea.hbm %s3139_s24, 32 }
 0x200   : > { %1864 = vmatmul.msk.bf16.vlgmr.msra.gmra.mxu0 %vm1028_vm3, %v1009_v0 }
 0x27d   : > { %v1041_v2 = vpop.f32.mrf.mxu0 }
 0x27e   : > { %v1042_v3 = vadd.f32 %v2169_v1, %v1041_v2 }
 0x280   : > { %1046 = vrot.lane.b32.xlu1 %v1042_v3, %s2497_s8  ;;  %1049 = vrot.lane.b32.xlu0 %v1042_v3, %s2498_s19  ;;  %v1058_v18 = vrot.slane %v1042_v3, 4  ;;  %s3138_s19 = sld [smem:[#allocation25_spill]]  ;;  %s1695_s8 = sshll.u32 %s413_s25, 4  ;;  %s1696_s8 = int_to_ptr.vmem [resolvable:$true] %s1695_s8 }
 0x285   : > { %v1043_v4 = vpop.f32.mrf.mxu0 }
 0x288   : > { %1052 = vrot.lane.b32.xlu0 %v1042_v3, %s2499_s7  ;;  %s1691_s7 = sadd.s32 %s3136_s26, %s1936_s4 }
 0x2f2   : > { %v1050_v15 = vpop.permute.xlu0 %1049  ;;  %v1047_v21 = vpop.permute.xlu1 %1046 }
 0x2f3   : > { %v1055_v16 = vrot.slane %v1050_v15, 4  ;;  %v1059_v20 = vsel %vm1056_vm5, %v1050_v15, %v1058_v18  ;;  %v1070_v26 = vrot.slane %v1047_v21, 4 }
 0x2f4   : > { %v1067_v25 = vperm.slane %v1059_v20, %v1062_v19 }
 0x2f5   : > { %v1057_v22 = vsel %vm1056_vm5, %v1055_v16, %v1042_v3 }
 0x2f6   : > { %v1063_v27 = vperm.slane %v1057_v22, %v1062_v19  ;;  %v1094_v33 = vrot.slane %v1067_v25, 4 }
 0x2f8   : > { %v1082_v36 = vrot.slane %v1063_v27, 4 }
 0x2fa   : > { %v1053_v28 = vpop.permute.xlu0 %1052 }
 0x2fb   : > { %v1068_v31 = vrot.slane %v1053_v28, 4  ;;  %v1071_v32 = vsel %vm1056_vm5, %v1053_v28, %v1070_v26  ;;  %v2170_v26 = vld [vmem:[%s2706_s11] ss:$0 sm:$0xff]  ;;  %s1937_s11 = sshll.u32 %s1691_s7, 3  ;;  %s3140_s7 = sand.u32 1, %s2446_s28  }
 0x2fc   : > { %v1079_v34 = vperm.slane %v1071_v32, %v1062_v19  ;;  %s1693_s23 = scalar_lea.hbm %s3139_s24, %s1937_s11  ;;  %s1681_s3 = scalar_lea.sflag [#allocation6], %s3140_s7 }
 0x2fd   : > { %v1069_v35 = vsel %vm1056_vm5, %v1068_v31, %v1047_v21  ;;  %s1697_s4 = sshll.u32 %s1693_s23, 4  ;;  %s1698_s4 = int_to_ptr.hbm [resolvable:$true] %s1697_s4 }
 0x2fe   : > { %v1075_v37 = vperm.slane %v1069_v35, %v1062_v19  ;;  %v1092_v29 = vrot.slane %v1079_v34, 4  ;;  %v1095_v38 = vsel %vm1056_vm5, %v1079_v34, %v1094_v33  ;;  %s2366_s11 = sshra.s32 %s1698_s4, 4  ;;  %s2367_s11 = int_to_ptr.hbm [resolvable:$true] %s2366_s11 }
 0x2ff   : > { %v1103_v39 = vperm.slane %v1095_v38, %v1086_v30  ;;  %s2368_s17 = scalar_lea.hbm %s2367_s11, 8  ;;  %p2373_p0 = scmp.lt.s32.totalorder %s2367_s11, %s3139_s24 }
 0x300   : > { %v1080_v40 = vrot.slane %v1075_v37, 4  ;;  %v1083_v41 = vsel %vm1056_vm5, %v1075_v37, %v1082_v36  ;;  %v1093_v42 = vsel %vm1056_vm5, %v1092_v29, %v1067_v25  ;;  %p2369_p10 = scmp.ne.s32.totalorder %s2367_s11, %s2368_s17  ;;  %p2374_p3 = scmp.lt.s32.totalorder %s2372_s30, %s2368_s17 }
 0x301   : > { %v1091_v43 = vperm.slane %v1083_v41, %v1086_v30  ;;  %v1099_v44 = vperm.slane %v1093_v42, %v1086_v30  ;;  %v1110_v45 = vrot.slane %v1103_v39, 4 }
 0x302   : > { %v1081_v46 = vsel %vm1056_vm5, %v1080_v40, %v1063_v27  ;;  %p2370_p12 = pnand %p2369_p10, %p2681_p8  ;;  %p2375_p5 = por %p2374_p3, %p2373_p0 }
 0x303   : > { %v1087_v47 = vperm.slane %v1081_v46, %v1086_v30  ;;  %v1106_v49 = vrot.slane %v1091_v43, 4  ;;  %v1108_v50 = vrot.slane %v1099_v44, 4  ;;  %v1111_v51 = vsel %vm1056_vm5, 0.0, %v1110_v45 }
 0x304   : > { %v1123_v52 = vsel %vm1056_vm5, %v1110_v45, %v1099_v44  ;;  %v1128_v53 = vrot.slane %v1111_v51, 4  ;;  %p2371_p13 = pneg %p2370_p12 }
 0x305   : > { %v1104_v54 = vrot.slane %v1087_v47, 4  ;;  %v1107_v55 = vsel %vm1056_vm5, 0.0, %v1106_v49  ;;  %v1109_v56 = vsel %vm1056_vm5, 0.0, %v1108_v50  ;;  %v1127_v57 = vperm.slane %v1123_v52, %v1062_v19 }
 0x306   : > { %v1117_v48 = vrot.slane %v1107_v55, 4  ;;  %v1129_v58 = vsel %vm1056_vm5, %v1128_v53, %v1109_v56  ;;  %v1112_v59 = vsel %vm1056_vm5, %v1106_v49, %v1087_v47  ;;  %p2376_p6 = pnand %p2375_p5, %p2371_p13 }
 0x307   : > { %v1105_v60 = vsel %vm1056_vm5, 0.0, %v1104_v54  ;;  %v1116_v61 = vperm.slane %v1112_v59, %v1062_v19  ;;  %v1133_v17 = vperm.slane %v1129_v58, %v1062_v19  ;;  %v1148_v62 = vrot.slane %v1127_v57, 4 }
 0x308   : > { %v1118_v0 = vsel %vm1056_vm5, %v1117_v48, %v1105_v60 }
 0x309   : > { %v1122_v1 = vperm.slane %v1118_v0, %v1062_v19  ;;  %v1136_v2 = vrot.slane %v1116_v61, 4  ;;  %v1149_v3 = vsel %vm1056_vm5, %v1133_v17, %v1148_v62  ;;  %v1146_v4 = vrot.slane %v1133_v17, 4  ;;  %v1950_v62 = vld [vmem:[#allocation3 + $0x8] sm:$0xff]  ;;  %v1951_v0 = vld [vmem:[#allocation3 + $0x10] sm:$0xff] }
 0x30a   : > { %v1157_v5 = vperm.slane %v1149_v3, %v1086_v30  ;;  %1373 = vmatpush.bf16.msrb.mxu2 %v1950_v62  ;;  %1395 = vmatpush.bf16.msrb.mxu3 %v1951_v0 }
 0x30b   : > { %v1137_v6 = vsel %vm1056_vm5, %v1122_v1, %v1136_v2  ;;  %v1134_v7 = vrot.slane %v1122_v1, 4  ;;  %v1147_v8 = vsel %vm1056_vm5, %v1146_v4, %v1127_v57  ;;  %v1949_v1 = vld [vmem:[#allocation3] sm:$0xff]  ;;  %v1952_v2 = vld [vmem:[#allocation3 + $0x18] sm:$0xff] }
 0x30c   : > { %v1145_v9 = vperm.slane %v1137_v6, %v1086_v30  ;;  %v1162_v10 = vrot.slane %v1157_v5, 4  ;;  %v1153_v11 = vperm.slane %v1147_v8, %v1086_v30  ;;  %1351 = vmatpush.bf16.msrb.mxu1 %v1949_v1  ;;  %1417 = vmatpush.bf16.msra.mxu0 %v1952_v2  ;;  %v1428_v4 = vld [vmem:[#allocation10 + $0x4] sm:$0xf] }
 0x30d   : > { %v1135_v12 = vsel %vm1056_vm5, %v1134_v7, %v1116_v61  ;;  %v1455_v6 = vsel %vm1434_vm7, %v1428_v4, 0 }
 0x30e   : > { %v1163_v13 = vsel %vm1056_vm5, %v1162_v10, %v1145_v9  ;;  %v1164_v14 = vrot.slane %v1145_v9, 4  ;;  %v1141_v15 = vperm.slane %v1135_v12, %v1086_v30  ;;  %v1158_v16 = vrot.slane %v1153_v11, 4 }
 0x30f   : > { %v1168_v18 = vpack.c.bf16 %v1163_v13, %v1163_v13 }
 0x310   : > { %v1159_v19 = vsel %vm1056_vm5, %v1158_v16, %v1141_v15  ;;  %v1165_v20 = vsel %vm1056_vm5, %v1157_v5, %v1164_v14  ;;  %v1160_v21 = vrot.slane %v1141_v15, 4  ;;  %v1429_v5 = vld [vmem:[#allocation10 + $0x8] sm:$0xf] }
 0x311   : > { %1879 = vmatmul.msk.bf16.vlgmr.msra.gmra.mxu3 %vm1186_vm4, %v1168_v18  ;;  %v1166_v22 = vpack.c.bf16 %v1159_v19, %v1159_v19  ;;  %v1169_v23 = vpack.c.bf16 %v1165_v20, %v1165_v20  ;;  %v1474_v7 = vsel %vm1434_vm7, %v1429_v5, 0 }
 0x312   : > { %v1161_v24 = vsel %vm1056_vm5, %v1153_v11, %v1160_v21  ;;  %1483 = vmatpush.bf16.msra.mxu3 %v1474_v7  ;;  %v1953_v7 = vld [vmem:[#allocation12] sm:$0xff] }
 0x313   : > { %1869 = vmatmul.msk.bf16.vlgmr.msra.gmra.mxu1 %vm1186_vm4, %v1166_v22  ;;  %1884 = vmatmul.msk.bf16.vlgmr.msrb.gmra.mxu0 %vm1186_vm4, %v1169_v23  ;;  %v1167_v25 = vpack.c.bf16 %v1161_v24, %v1161_v24  ;;  %v1427_v24 = vld [vmem:[#allocation10] sm:$0xf] }
 0x315   : > { %1874 = vmatmul.msk.bf16.vlgmr.msra.gmra.mxu2 %vm1186_vm4, %v1167_v25  ;;  %v1436_v25 = vsel %vm1434_vm7, %v1427_v24, 0 }
 0x316   : > { %1464 = vmatpush.bf16.msra.mxu2 %v1455_v6  ;;  %1445 = vmatpush.bf16.msra.mxu1 %v1436_v25  ;;  %v1954_v6 = vld [vmem:[#allocation12 + $0x8] sm:$0xff] }
 0x317   : > { %v1958_v25 = vld [vmem:[%s3138_s19 + $0x18] sm:$0xff] }
 0x390   : > { %v1202_v27 = vpop.f32.mrf.mxu1  ;;  %v1274_v28 = vpop.f32.mrf.mxu0 }
 0x391   : > { %v1275_v30 = vadd.f32 %v2170_v26, %v1274_v28  ;;  %v1203_v38 = vadd.f32 %v2170_v26, %v1202_v27 }
 0x393   : > { %v1288_v31 = vsel %vm1278_vm6, %v1275_v30, -inf  ;;  %v1279_v41 = vsel %vm1278_vm6, %v1203_v38, -inf }
 0x394   : > { %1289 = vmax.xlane.f32.xlu0 %v1288_v31  ;;  %v1250_v32 = vpop.f32.mrf.mxu3 }
 0x395   : > { %v1251_v33 = vadd.f32 %v2170_v26, %v1250_v32 }
 0x397   : > { %v1285_v34 = vsel %vm1278_vm6, %v1251_v33, -inf }
 0x398   : > { %v1276_v35 = vpop.f32.mrf.mxu0  ;;  %1286 = vmax.xlane.f32.xlu2 %v1285_v34  ;;  %v1204_v36 = vpop.f32.mrf.mxu1 }
 0x399   : > { %v1226_v37 = vpop.f32.mrf.mxu2 }
 0x39a   : > { %v1227_v29 = vadd.f32 %v2170_v26, %v1226_v37  ;;  %v1430_v26 = vld [vmem:[#allocation10 + $0xc] sm:$0xf] }
 0x39b   : > { %v1493_v27 = vsel %vm1434_vm7, %v1430_v26, 0  ;;  %v1957_v26 = vld [vmem:[%s3138_s19 + $0x10] sm:$0xff] }
 0x39c   : > { %v1252_v39 = vpop.f32.mrf.mxu3  ;;  %v1282_v40 = vsel %vm1278_vm6, %v1227_v29, -inf  ;;  %1502 = vmatpush.bf16.msrb.mxu0 %v1493_v27  ;;  %v1956_v27 = vld [vmem:[%s3138_s19 + $0x8] sm:$0xff] }
 0x39d   : > { %1283 = vmax.xlane.f32.xlu1 %v1282_v40 }
 0x3a0   : > { %1280 = vmax.xlane.f32.xlu2 %v1279_v41 }
 0x3a1   : > { %v1228_v42 = vpop.f32.mrf.mxu2 }
 0x407   : > { %v1290_v55 = vpop.xlane.xlu0 %1289 }
 0x408   : > { %v1294_v57 = vsub.f32 %v1275_v30, %v1290_v55 }
 0x40a   : > { %v1301_v58 = vmul.f32 1.442695, %v1294_v57 }
 0x40b   : > { %v1287_v43 = vpop.xlane.xlu2 %1286 }
 0x40c   : > { %v1293_v44 = vsub.f32 %v1251_v33, %v1287_v43 }
 0x40e   : > { %v1299_v45 = vmul.f32 1.442695, %v1293_v44 }
 0x410   : > { %2178 = vpow2.f32 %v1299_v45  ;;  %v1284_v46 = vpop.xlane.xlu1 %1283 }
 0x411   : > { %v1292_v47 = vsub.f32 %v1227_v29, %v1284_v46 }
 0x413   : > { %v1297_v49 = vmul.f32 1.442695, %v1292_v47  ;;  %v1281_v50 = vpop.xlane.xlu2 %1280 }
 0x414   : > { %v1291_v52 = vsub.f32 %v1203_v38, %v1281_v50 }
 0x415   : > { %2180 = vpow2.f32 %v1297_v49 }
 0x416   : > { %v2179_v51 = vpop.eup %2178  ;;  %v1295_v54 = vmul.f32 1.442695, %v1291_v52  ;;  %v2171_v52 = vld [vmem:[%s3137_s22 + $0x3] ss:$0 sm:$0xff] }
 0x417   : > { %v1309_v53 = vsel %vm1278_vm6, %v2179_v51, 0.0 }
 0x418   : > { %1310 = vadd.xlane.f32.xlu2 %v1309_v53  ;;  %2182 = vpow2.f32 %v1295_v54 }
 0x419   : > { %2184 = vpow2.f32 %v1301_v58 }
 0x41b   : > { %v2181_v56 = vpop.eup %2180 }
 0x41c   : > { %v1306_v48 = vsel %vm1278_vm6, %v2181_v56, 0.0 }
 0x41e   : > { %v2183_v59 = vpop.eup %2182 }
 0x41f   : > { %v1303_v60 = vsel %vm1278_vm6, %v2183_v59, 0.0  ;;  %v2185_v61 = vpop.eup %2184 }
 0x420   : > { %1307 = vadd.xlane.f32.xlu2 %v1306_v48  ;;  %v1312_v17 = vsel %vm1278_vm6, %v2185_v61, 0.0 }
 0x428   : > { %1304 = vadd.xlane.f32.xlu2 %v1303_v60 }
 0x430   : > { %1313 = vadd.xlane.f32.xlu2 %v1312_v17 }
 0x48b   : > { %v1311_v3 = vpop.xlane.xlu2 %1310 }
 0x48c   : > { %2186 = vrcp.f32 %v1311_v3 }
 0x492   : > { %v2187_v8 = vpop.eup %2186 }
 0x493   : > { %v1321_v9 = vmul.f32 %v2187_v8, %v2179_v51  ;;  %v1308_v10 = vpop.xlane.xlu2 %1307 }
 0x494   : > { %2188 = vrcp.f32 %v1308_v10 }
 0x495   : > { %v1325_v11 = vpack.c.bf16 %v1321_v9, %v1321_v9 }
 0x497   : > { %1899 = vmatmul.msk.bf16.vlgmr.msrb.gmra.mxu3 %vm1278_vm6, %v1325_v11 }
 0x49a   : > { %v2189_v12 = vpop.eup %2188 }
 0x49b   : > { %v1320_v13 = vmul.f32 %v2189_v12, %v2181_v56  ;;  %v1305_v14 = vpop.xlane.xlu2 %1304 }
 0x49c   : > { %2190 = vrcp.f32 %v1305_v14 }
 0x49d   : > { %v1324_v15 = vpack.c.bf16 %v1320_v13, %v1320_v13 }
 0x49f   : > { %1894 = vmatmul.msk.bf16.vlgmr.msrb.gmra.mxu2 %vm1278_vm6, %v1324_v15 }
 0x4a0   : > { %1641 = vmatpush.bf16.msrb.mxu2 %v1958_v25 }
 0x4a2   : > { %v2191_v16 = vpop.eup %2190 }
 0x4a3   : > { %v1319_v18 = vmul.f32 %v2191_v16, %v2183_v59  ;;  %v1314_v19 = vpop.xlane.xlu2 %1313  ;;  %v2502_v59 = vmov 32.0  }
 0x4a4   : > { %2192 = vrcp.f32 %v1314_v19  ;;  %1642 = vmatpush.bf16.msrb.mxu2 %v1957_v26 }
 0x4a5   : > { %v1323_v20 = vpack.c.bf16 %v1319_v18, %v1319_v18  ;;  %2194 = vrcp.f32 %v2502_v59  ;;  %v2172_v18 = vld [vmem:[%s3137_s22 + $0x4] ss:$0 sm:$0xff] }
 0x4a7   : > { %1889 = vmatmul.msk.bf16.vlgmr.msrb.gmra.mxu1 %vm1278_vm6, %v1323_v20  ;;  %v2173_v20 = vld [vmem:[%s3137_s22 + $0x5] ss:$0 sm:$0xff] }
 0x4a8   : > { %1582 = vmatpush.bf16.msrb.mxu1 %v1954_v6  ;;  %1643 = vmatpush.bf16.msrb.mxu2 %v1956_v27 }
 0x4aa   : > { %v2193_v21 = vpop.eup %2192 }
 0x4ab   : > { %v1322_v22 = vmul.f32 %v2193_v21, %v2185_v61  ;;  %v2195_v60 = vpop.eup %2194 }
 0x4ac   : > { %v1525_v61 = vmul.f32 32.0, %v2195_v60  ;;  %vm1529_vm8 = vweird.f32 %v2195_v60  ;;  %1583 = vmatpush.bf16.msrb.mxu1 %v1953_v7 }
 0x4ad   : > { %v1326_v23 = vpack.c.bf16 %v1322_v22, %v1322_v22 }
 0x4ae   : > { %v1526_v17 = vsub.f32 1.0, %v1525_v61 }
 0x4af   : > { %1904 = vmatmul.msk.bf16.vlgmr.msra.gmra.mxu0 %vm1278_vm6, %v1326_v23 }
 0x4b0   : > { %v1527_v62 = vmul.f32 %v2195_v60, %v1526_v17 }
 0x4b2   : > { %v1528_v0 = vadd.f32 %v2195_v60, %v1527_v62  ;;  %v2176_v62 = vld [vmem:[%s3137_s22 + $0x8] ss:$0 sm:$0xff] }
 0x4b4   : > { %v2998_v1 = vsel %vm1529_vm8, %v2195_v60, %v1528_v0 }
 0x51a   : > { %v1397_v28 = vpop.f32.mrf.mxu3 }
 0x51b   : > { %v1425_v30 = vpack.c.bf16 %v1397_v28, %v1397_v28  ;;  %v1955_v28 = vld [vmem:[%s3138_s19] sm:$0xff] }
 0x51c   : > { %1644 = vmatpush.bf16.msrb.mxu2 %v1955_v28 }
 0x51d   : > { %1907 = vmatmul.msk.bf16.vlgmr.msra.gmra.mxu3 %vm1186_vm4, %v1425_v30  ;;  %v2174_v30 = vld [vmem:[%s3137_s22 + $0x6] ss:$0 sm:$0xff] }
 0x522   : > { %v1375_v31 = vpop.f32.mrf.mxu2  ;;  %v1399_v32 = vpop.f32.mrf.mxu3 }
 0x523   : > { %v1424_v33 = vpack.c.bf16 %v1375_v31, %v1375_v31 }
 0x524   : > { %v1353_v34 = vpop.f32.mrf.mxu1 }
 0x525   : > { %v1423_v35 = vpack.c.bf16 %v1353_v34, %v1353_v34  ;;  %1906 = vmatmul.msk.bf16.vlgmr.msra.gmra.mxu2 %vm1186_vm4, %v1424_v33 }
 0x527   : > { %1905 = vmatmul.msk.bf16.vlgmr.msra.gmra.mxu1 %vm1186_vm4, %v1423_v35 }
 0x52a   : > { %v1377_v36 = vpop.f32.mrf.mxu2 }
 0x52c   : > { %v1355_v37 = vpop.f32.mrf.mxu1  ;;  %v1419_v29 = vpop.f32.mrf.mxu0 }
 0x52d   : > { %v1426_v38 = vpack.c.bf16 %v1419_v29, %v1419_v29 }
 0x52f   : > { %1908 = vmatmul.msk.bf16.vlgmr.msrb.gmra.mxu0 %vm1186_vm4, %v1426_v38 }
 0x534   : > { %v1421_v39 = vpop.f32.mrf.mxu0 }
 0x5a0   : > { %v1485_v40 = vpop.f32.mrf.mxu3 }
 0x5a1   : > { %v1511_v47 = vsel %vm1028_vm3, %v1485_v40, 0.0 }
 0x5a4   : > { %v1447_v41 = vpop.f32.mrf.mxu1 }
 0x5a5   : > { %v1508_v44 = vsel %vm1028_vm3, %v1447_v41, 0.0 }
 0x5a8   : > { %v1466_v42 = vpop.f32.mrf.mxu2  ;;  %v1487_v43 = vpop.f32.mrf.mxu3 }
 0x5a9   : > { %v1509_v45 = vsel %vm1028_vm3, %v1466_v42, 0.0  ;;  %v2175_v43 = vld [vmem:[%s3137_s22 + $0x7] ss:$0 sm:$0xff] }
 0x5aa   : > { %v1510_v46 = vadd.f32 %v1509_v45, %v1508_v44 }
 0x5ac   : > { %v1449_v49 = vpop.f32.mrf.mxu1  ;;  %v1504_v50 = vpop.f32.mrf.mxu0  ;;  %v1512_v51 = vadd.f32 %v1511_v47, %v1510_v46 }
 0x5ad   : > { %v1513_v53 = vsel %vm1028_vm3, %v1504_v50, 0.0 }
 0x5ae   : > { %v1514_v54 = vadd.f32 %v1513_v53, %v1512_v51 }
 0x5b0   : > { %v1517_v55 = vadd.f32 %v2171_v52, %v1514_v54  ;;  %v1468_v56 = vpop.f32.mrf.mxu2 }
 0x5b2   : > { %v1518_v57 = vadd.f32 %v1517_v55, %v2928_v63 }
 0x5b4   : > { %v1506_v48 = vpop.f32.mrf.mxu0  ;;  %v1521_v58 = vsel %vm1028_vm3, %v1518_v57, 0.0 }
 0x5b5   : > { %1522 = vadd.xlane.f32.xlu2 %v1521_v58 }
 0x628   : > { %v1523_v2 = vpop.xlane.xlu2 %1522 }
 0x629   : > { %v1531_v3 = vmul.f32 %v2998_v1, %v1523_v2  ;;  %v2177_v2 = vld [vmem:[%s3137_s22 + $0x9] ss:$0 sm:$0xff] }
 0x62b   : > { %v1532_v4 = vsub.f32 %v1518_v57, %v1531_v3 }
 0x62d   : > { %v1533_v5 = vmul.f32 %v1532_v4, %v1532_v4 }
 0x62f   : > { %v1534_v63 = vsel %vm1028_vm3, %v1533_v5, 0.0 }
 0x630   : > { %1535 = vadd.xlane.f32.xlu1 %v1534_v63 }
 0x6a3   : > { %v1536_v8 = vpop.xlane.xlu1 %1535 }
 0x6a4   : > { %v1537_v9 = vmul.f32 %v1536_v8, %v2998_v1 }
 0x6a6   : > { %v1538_v10 = vadd.f32 1e-12, %v1537_v9 }
 0x6a8   : > { %2196 = vrsqrt.f32 %v1538_v10  ;;  %vm1545_vm10 = vweird.f32 %v1538_v10 }
 0x6ae   : > { %v2197_v11 = vpop.eup %2196 }
 0x6af   : > { %v1540_v12 = vmul.f32 %v2197_v11, %v1538_v10  ;;  %vm1546_vm9 = vweird.f32 %v2197_v11 }
 0x6b0   : > { %vm1547_vm11 = vmor %vm1545_vm10, %vm1546_vm9 }
 0x6b1   : > { %v1541_v13 = vmul.f32 %v2197_v11, %v1540_v12 }
 0x6b3   : > { %v1542_v14 = vmul.f32 0.5, %v1541_v13 }
 0x6b5   : > { %v1543_v15 = vsub.f32 1.5, %v1542_v14 }
 0x6b7   : > { %v1544_v16 = vmul.f32 %v2197_v11, %v1543_v15 }
 0x6b9   : > { %v1548_v19 = vsel %vm1547_vm11, %v2197_v11, %v1544_v16 }
 0x6ba   : > { %v1549_v21 = vmul.f32 %v1548_v19, %v1532_v4 }
 0x6bc   : > { %v1551_v22 = vmul.f32 %v2172_v18, %v1549_v21 }
 0x6be   : > { %v1553_v23 = vadd.f32 %v2173_v20, %v1551_v22 }
 0x6c0   : > { %v1554_v24 = vpack.c.bf16 %v1553_v23, %v1553_v23 }
 0x6c2   : > { %1917 = vmatmul.msk.bf16.vlgmr.msrb.gmra.mxu1 %vm1028_vm3, %v1554_v24 }
 0x73f   : > { %v1585_v31 = vpop.f32.mrf.mxu1 }
 0x740   : > { %v1586_v32 = vadd.f32 %v2174_v30, %v1585_v31 }
 0x742   : > { %v1590_v33 = vmul.f32 0.044715, %v1586_v32  ;;  %v1589_v39 = vmul.f32 0.5, %v1586_v32 }
 0x744   : > { %v1591_v34 = vmul.f32 %v1590_v33, %v1586_v32 }
 0x746   : > { %v1592_v35 = vmul.f32 %v1591_v34, %v1586_v32 }
 0x747   : > { %v1587_v36 = vpop.f32.mrf.mxu1 }
 0x748   : > { %v1593_v37 = vadd.f32 %v1592_v35, %v1586_v32 }
 0x74a   : > { %v1594_v29 = vmul.f32 0.7978845, %v1593_v37 }
 0x74c   : > { %2198 = vtanh.f32 %v1594_v29 }
 0x752   : > { %v2199_v38 = vpop.eup %2198 }
 0x753   : > { %v1596_v40 = vadd.f32 1.0, %v2199_v38 }
 0x755   : > { %v1597_v41 = vmul.f32 %v1596_v40, %v1589_v39 }
 0x757   : > { %v1598_v42 = vpack.c.bf16 %v1597_v41, %v1597_v41 }
 0x759   : > { %1934 = vmatmul.msk.bf16.vlgmr.msrb.gmra.mxu2 %vm1633_vm12, %v1598_v42 }
 0x7dc   : > { %v1646_v44 = vpop.f32.mrf.mxu2 }
 0x7dd   : > { %v1647_v45 = vadd.f32 %v2175_v43, %v1646_v44 }
 0x7df   : > { %v1650_v46 = vadd.f32 %v1647_v45, %v1553_v23 }
 0x7e1   : > { %v1653_v47 = vsel %vm1028_vm3, %v1650_v46, 0.0 }
 0x7e2   : > { %1654 = vadd.xlane.f32.xlu2 %v1653_v47 }
 0x7e4   : > { %v1648_v49 = vpop.f32.mrf.mxu2 }
 0x855   : > { %v1655_v50 = vpop.xlane.xlu2 %1654 }
 0x856   : > { %v1656_v51 = vmul.f32 %v1655_v50, %v2998_v1 }
 0x858   : > { %v1657_v52 = vsub.f32 %v1650_v46, %v1656_v51 }
 0x85a   : > { %v1658_v53 = vmul.f32 %v1657_v52, %v1657_v52 }
 0x85c   : > { %v1659_v54 = vsel %vm1028_vm3, %v1658_v53, 0.0 }
 0x85d   : > { %1660 = vadd.xlane.f32.xlu0 %v1659_v54 }
 0x8d0   : > { %v1661_v55 = vpop.xlane.xlu0 %1660 }
 0x8d1   : > { %v1662_v56 = vmul.f32 %v1661_v55, %v2998_v1 }
 0x8d3   : > { %v1663_v57 = vadd.f32 1e-12, %v1662_v56 }
 0x8d5   : > { %2200 = vrsqrt.f32 %v1663_v57  ;;  %vm1670_vm14 = vweird.f32 %v1663_v57 }
 0x8db   : > { %v2201_v48 = vpop.eup %2200 }
 0x8dc   : > { %v1665_v58 = vmul.f32 %v2201_v48, %v1663_v57  ;;  %vm1671_vm13 = vweird.f32 %v2201_v48 }
 0x8dd   : > { %vm1672_vm15 = vmor %vm1670_vm14, %vm1671_vm13 }
 0x8de   : > { %v1666_v59 = vmul.f32 %v2201_v48, %v1665_v58 }
 0x8e0   : > { %v1667_v60 = vmul.f32 0.5, %v1666_v59 }
 0x8e2   : > { %v1668_v61 = vsub.f32 1.5, %v1667_v60 }
 0x8e4   : > { %v1669_v17 = vmul.f32 %v2201_v48, %v1668_v61 }
 0x8e6   : > { %v1673_v0 = vsel %vm1672_vm15, %v2201_v48, %v1669_v17 }
 0x8e7   : > { %v1674_v1 = vmul.f32 %v1673_v0, %v1657_v52 }
 0x8e9   : > { %v1676_v3 = vmul.f32 %v2176_v62, %v1674_v1 }
 0x8eb   : > { %v1678_v4 = vadd.f32 %v2177_v2, %v1676_v3 }
 0x8ed   : > { %1679 = vst.msk [vmem:[%s413_s25] sm:$0xff] %vm1028_vm3, %v1678_v4 }
 0x8ee   : > { %2379 = shalt.err (!%p2376_p6)
}
 0x8ef   : > { %1977 = dma.vmem_to_hbm [thread:$0]  (%p2681_p8), %s1696_s8, 128, %s1698_s4, %s1681_s3  }
 0x8f0 PF: > { %p2009_p7 = scmp.ge.s32.totalorder %s2482_s15, 2  ;;  %s1709_s6 = sand.u32 1, %s2442_s27  }
 0x8f1   : > { %s1710_s25 = scalar_lea.sflag [#allocation6], %s1709_s6 }
 0x8f2   : > { %p1997_p11 = pnand %p2009_p7, %p2691_p9 }
 0x8f4   : > { %p1998_p2 = pneg %p1997_p11 }
 0x8f6   : > { %2437 = dma.done.wait (%p1998_p2), %s1710_s25, 128  }
 0x8f7   : > { %2439 = vsyncadd (%p1998_p2), %s1710_s25, 4294967168  ;;  %s26_s15 = sadd.s32 1, %s2482_s15   ;;  %s3141_s16 = sld [smem:[#allocation19_spill]] }
 0x8f8   : > { %p23_p4 = scmp.ge.s32.totalorder %s26_s15, 6   ;;  %s3142_s27 = smov %s2446_s28 }
 0x8f9   : > { %s3143_s28 = smov %s2450_s29  ;;  %s3144_s29 = smov %s2689_s21 }
 0x8fa   : > { %s3145_s30 = smov %s2458_s9  ;;  %s3146_s9 = smov %s2462_s10 }
 0x8fb   : > { %s3147_s10 = smov %s2686_s20  ;;  %s3148_s11 = smov %s2474_s13 }
 0x8fc   : > { %s3149_s12 = smov %s2478_s14  ;;  %s3150_s13 = smov %s3153_s5 }
 0x8fd   : > { %s3151_s14 = smov %s3141_s16  ;;  %25 = sbr.rel (!%p23_p4) target bundleno = 19 (0x13), region = 121 }
 0x902   :  { %1716 = vsyncpa [#allocation5], 1 }
 0x903   :  { %1718 = vsyncpa [#allocation5 + $0x1], 1 }
 0x904   :  { %1719 = vsyncpa [#allocation8], 1 }
 0x905   :  { %1720 = vsyncpa [#allocation11], 1 }
 0x906   :  { %1721 = vsyncpa [#allocation6], 1 }
 0x907   :  { %1723 = vsyncpa [#allocation6 + $0x1], 1 }

</bundles_post_ra>
